<compile_context>
chip_gen: v7x
topology: tpu7x:2x2x1
jax: 0.10.0
libtpu: 0.0.40
codegen_flags: <defaults>
</compile_context>

<pallas_src>
import jax
import jax.numpy as jnp
from jax import lax
from jax.experimental import pallas as pl
from jax.experimental.pallas import tpu as pltpu

H = 20          # LSTM hidden size (fixed by the module)
GP = 128        # lanes per gate slot (vreg-aligned gate padding)
NG = 4          # gates per direction, kernel order: i, f, o, g

# MLP-head slab row offsets (all 8-aligned so ref slices stay tile-aligned).
HEAD_W1F = 0                 # (GP, 32)  linear_1 rows fed by the fwd direction
HEAD_W1B = GP                # (GP, 32)  linear_1 rows fed by the bwd direction
HEAD_B1 = 2 * GP             # (1, 32)
HEAD_W2 = HEAD_B1 + 8        # (32, 32)  linear_2, cols [16:32) zero
HEAD_B2 = HEAD_W2 + 32       # (1, 32)
HEAD_W3 = HEAD_B2 + 8        # (32, 32)  linear_3 in rows [0:16) x cols [0:6)
HEAD_B3 = HEAD_W3 + 32       # (1, 32)
HEAD_ROWS = HEAD_B3 + 8


def _round_up(n, m):
    return ((n + m - 1) // m) * m


def _lstm_offsets(epad):
    """Row offsets inside the LSTM slab for padded embedding width `epad`."""
    r_bias = _round_up(2 * epad, 8)      # fused b_ih+b_hh row
    r_whh = r_bias + 8                   # recurrent weight rows (GP of them)
    return r_bias, r_whh, r_whh + GP


def _model_kernel(x_ref, emb_ref, lstm_ref, head_ref, out_ref):
    BL = x_ref.shape[0]
    B = out_ref.shape[0]
    L = BL // B
    Vp1, EPAD = emb_ref.shape            # embedding lanes pre-padded to GP
    inv_l = 1.0 / float(L)
    r_bias, r_whh, _ = _lstm_offsets(EPAD)

    # ---- EmbeddingBag(mode='mean'): one-hot + stacked averaging matmul ----
    # TODO(synk): for realistic vocab sizes keep `emb` in HBM
    # (BlockSpec(memory_space=pl.ANY)) and DMA-gather the B*L rows instead of
    # building a (B*L, V+1) one-hot; at V=32 the table trivially fits VMEM.
    idx = x_ref[...]                                               # (BL, 1) int32
    vocab_iota = lax.broadcasted_iota(jnp.int32, (BL, Vp1), 1)
    onehot = (idx == vocab_iota).astype(jnp.float32)               # (BL, V+1)
    tok_emb = jnp.dot(onehot, emb_ref[...],
                      preferred_element_type=jnp.float32)          # (BL, EPAD)

    # Rows [0:B) average bag t (forward order); rows [B:2B) average bag
    # B-1-t (reversed order = the backward direction's input sequence).
    row = lax.broadcasted_iota(jnp.int32, (2 * B, BL), 0)
    col = lax.broadcasted_iota(jnp.int32, (2 * B, BL), 1)
    lo = jnp.minimum(row, 2 * B - 1 - row) * L
    avg = ((col >= lo) & (col < lo + L)).astype(jnp.float32) * inv_l
    emb2 = jnp.dot(avg, tok_emb, preferred_element_type=jnp.float32)  # (2B, EPAD)

    # ---- Fused input projection for both directions (single matmul) ----
    # gin row t: fwd gate inputs of step t in lanes [k*GP, k*GP+H) and bwd
    # gate inputs of step B-1-t in lanes [k*GP+H, k*GP+2H); zeros elsewhere.
    embcat = jnp.concatenate([emb2[0:B, :], emb2[B:2 * B, :]], axis=1)  # (B, 2*EPAD)
    gin = (jnp.dot(embcat, lstm_ref[0:2 * EPAD, :],
                   preferred_element_type=jnp.float32)
           + lstm_ref[r_bias:r_bias + 1, :])                       # (B, 4*GP)

    whh = lstm_ref[r_whh:r_whh + GP, :]                            # (GP, 4*GP)

    # ---- Merged fwd+bwd LSTM recurrence (static unroll, state in vregs) ----
    # TODO(synk): holding W_hh resident in the MXU across steps
    # (pltpu.matmul_push_rhs / matmul_acc_lhs, MRB-accumulated gin on v7x)
    # would shave the per-step weight push, but the explicit-MXU path needs
    # per-chip staging-tile handling that cannot be validated here; the plain
    # per-step dot (default MXU precision) is kept.
    row_ids = lax.broadcasted_iota(jnp.int32, (B, GP), 0)
    h = jnp.zeros((1, GP), jnp.float32)   # lanes [0:H)=h_fwd, [H:2H)=h_bwd, rest 0
    c = jnp.zeros((1, GP), jnp.float32)
    hist_f = jnp.zeros((B, GP), jnp.float32)
    hist_b = jnp.zeros((B, GP), jnp.float32)
    for t in range(B):
        gates = gin[t:t + 1, :] + jnp.dot(h, whh,
                                          preferred_element_type=jnp.float32)
        sig = jax.nn.sigmoid(gates[:, 0:3 * GP])       # i | f | o  (one region)
        g = jnp.tanh(gates[:, 3 * GP:4 * GP])          # g          (one region)
        i_g = sig[:, 0:GP]                             # vreg-aligned slices
        f_g = sig[:, GP:2 * GP]
        o_g = sig[:, 2 * GP:3 * GP]
        c = f_g * c + i_g * g
        h = o_g * jnp.tanh(c)
        # Merge h into the history values (one-vreg selects, off the serial
        # h->c->h chain; replaces the old VMEM scratch stores/loads).
        hist_f = jnp.where(row_ids == t, h, hist_f)            # fwd state of step t
        hist_b = jnp.where(row_ids == (B - 1 - t), h, hist_b)  # bwd state, reordered

    hh_f = jnp.tanh(hist_f)   # lanes [0:H) valid; padded lanes hit zero W rows
    hh_b = jnp.tanh(hist_b)   # lanes [H:2H) valid

    # ---- MLP head (linear_1 split per direction; rest zero-padded to 32) ----
    out = (jnp.dot(hh_f, head_ref[HEAD_W1F:HEAD_W1F + GP, :],
                   preferred_element_type=jnp.float32)
           + jnp.dot(hh_b, head_ref[HEAD_W1B:HEAD_W1B + GP, :],
                     preferred_element_type=jnp.float32)
           + head_ref[HEAD_B1:HEAD_B1 + 1, :])
    out = jnp.maximum(out, 0.0)
    out = jnp.maximum(
        jnp.dot(out, head_ref[HEAD_W2:HEAD_W2 + 32, :],
                preferred_element_type=jnp.float32)
        + head_ref[HEAD_B2:HEAD_B2 + 1, :], 0.0)
    out = jax.nn.sigmoid(
        jnp.dot(out, head_ref[HEAD_W3:HEAD_W3 + 32, :],
                preferred_element_type=jnp.float32)
        + head_ref[HEAD_B3:HEAD_B3 + 1, :])
    out_ref[...] = out[:, 0:6]


# ------------------------- host-side weight packing -------------------------
def _reorder_gates(w):
    """Permute last axis from PyTorch LSTM gate order (i,f,g,o) to (i,f,o,g)."""
    return jnp.concatenate(
        [w[:, 0:H], w[:, H:2 * H], w[:, 3 * H:4 * H], w[:, 2 * H:3 * H]], axis=1)


def _pad_gates(w, lane_offset):
    """(rows, 4H) gate-major (i,f,o,g) -> (rows, 4*GP): gate k occupies lanes
    [k*GP+lane_offset, k*GP+lane_offset+H); zeros elsewhere."""
    out = jnp.zeros((w.shape[0], NG * GP), jnp.float32)
    for k in range(NG):
        out = out.at[:, k * GP + lane_offset:k * GP + lane_offset + H].set(
            w[:, k * H:(k + 1) * H])
    return out


def pack_params(p):
    """Pack the 13 layer tensors into 3 kernel inputs: a lane-padded embedding
    table, one LSTM slab and one MLP-head slab (run once, host/XLA side)."""
    Vp1, E = p["emb"].shape
    epad = _round_up(E, GP)
    r_bias, r_whh, n_rows = _lstm_offsets(epad)

    emb = jnp.zeros((Vp1, epad), jnp.float32).at[:, 0:E].set(p["emb"])

    lstm = jnp.zeros((n_rows, NG * GP), jnp.float32)
    lstm = lstm.at[0:E].set(_pad_gates(_reorder_gates(p["wih_f"]), 0))
    lstm = lstm.at[epad:epad + E].set(_pad_gates(_reorder_gates(p["wih_b"]), H))
    lstm = lstm.at[r_bias:r_bias + 1].set(
        _pad_gates(_reorder_gates(p["b_f"]), 0)
        + _pad_gates(_reorder_gates(p["b_b"]), H))
    lstm = lstm.at[r_whh:r_whh + H].set(_pad_gates(_reorder_gates(p["whh_f"]), 0))
    lstm = lstm.at[r_whh + H:r_whh + 2 * H].set(
        _pad_gates(_reorder_gates(p["whh_b"]), H))

    head = jnp.zeros((HEAD_ROWS, 32), jnp.float32)
    head = head.at[HEAD_W1F:HEAD_W1F + H].set(p["w1"][0:H])
    head = head.at[HEAD_W1B + H:HEAD_W1B + 2 * H].set(p["w1"][H:2 * H])
    head = head.at[HEAD_B1:HEAD_B1 + 1].set(p["b1"])
    head = head.at[HEAD_W2:HEAD_W2 + 32, 0:16].set(p["w2"])
    head = head.at[HEAD_B2:HEAD_B2 + 1, 0:16].set(p["b2"])
    head = head.at[HEAD_W3:HEAD_W3 + 16, 0:6].set(p["w3"])
    head = head.at[HEAD_B3:HEAD_B3 + 1, 0:6].set(p["b3"])
    return {"emb": emb, "lstm": lstm, "head": head}


@jax.jit
def model_forward(x, packed):
    B, L = x.shape
    x_flat = x.reshape(B * L, 1).astype(jnp.int32)
    vmem = pl.BlockSpec(memory_space=pltpu.MemorySpace.VMEM)
    return pl.pallas_call(
        _model_kernel,
        out_shape=jax.ShapeDtypeStruct((B, 6), jnp.float32),
        in_specs=[vmem, vmem, vmem, vmem],
        out_specs=vmem,
    )(x_flat, packed["emb"], packed["lstm"], packed["head"])


# ------------------------- pure-JAX reference -------------------------
def reference_forward(x, p):
    emb = jnp.mean(p["emb"][x], axis=1)                               # (B, E)

    def run_dir(seq, wih, whh, b):
        b_vec = b.reshape(-1)

        def step(carry, x_t):
            h, c = carry
            gates = x_t @ wih + h @ whh + b_vec
            i = jax.nn.sigmoid(gates[:H]); f = jax.nn.sigmoid(gates[H:2 * H])
            g = jnp.tanh(gates[2 * H:3 * H]); o = jax.nn.sigmoid(gates[3 * H:])
            c = f * c + i * g
            h = o * jnp.tanh(c)
            return (h, c), h

        init = (jnp.zeros(H, jnp.float32), jnp.zeros(H, jnp.float32))
        _, hs = lax.scan(step, init, seq)
        return hs

    with jax.default_matmul_precision("highest"):
        hf = run_dir(emb, p["wih_f"], p["whh_f"], p["b_f"])
        hb = run_dir(emb[::-1], p["wih_b"], p["whh_b"], p["b_b"])[::-1]
        out = jnp.tanh(jnp.concatenate([hf, hb], axis=1))
        out = jax.nn.relu(out @ p["w1"] + p["b1"][0])
        out = jax.nn.relu(out @ p["w2"] + p["b2"][0])
        out = jax.nn.sigmoid(out @ p["w3"] + p["b3"][0])
    return out


def init_params(key, vocab_size, embed_dim):
    ks = jax.random.split(key, 16)
    E, Vp1 = embed_dim, vocab_size + 1

    def uni(k, shape, fan_in):
        bound = 1.0 / jnp.sqrt(float(fan_in))
        return jax.random.uniform(k, shape, jnp.float32, -bound, bound)

    return {
        "emb":   jax.random.normal(ks[0], (Vp1, E), jnp.float32),
        # forward-direction LSTM (pre-transposed: (in, 4H), PyTorch gate order
        # i,f,g,o), bias = b_ih + b_hh fused
        "wih_f": uni(ks[1], (E, 4 * H), H),
        "whh_f": uni(ks[2], (H, 4 * H), H),
        "b_f":   uni(ks[3], (1, 4 * H), H) + uni(ks[4], (1, 4 * H), H),
        # reverse-direction LSTM
        "wih_b": uni(ks[5], (E, 4 * H), H),
        "whh_b": uni(ks[6], (H, 4 * H), H),
        "b_b":   uni(ks[7], (1, 4 * H), H) + uni(ks[8], (1, 4 * H), H),
        # MLP head (pre-transposed)
        "w1": uni(ks[9], (2 * H, 32), 2 * H),  "b1": uni(ks[10], (1, 32), 2 * H),
        "w2": uni(ks[11], (32, 16), 32),       "b2": uni(ks[12], (1, 16), 32),
        "w3": uni(ks[13], (16, 6), 16),        "b3": uni(ks[14], (1, 6), 16),
    }


if __name__ == "__main__":
    vocab_size, embed_dim = 32, 32
    B, L = 8, 8   # B bags (= LSTM sequence length), L tokens per bag

    key = jax.random.PRNGKey(0)
    k_x, k_p = jax.random.split(key)
    x = jax.random.randint(k_x, (B, L), 0, vocab_size + 1, dtype=jnp.int32)
    params = init_params(k_p, vocab_size, embed_dim)
    packed = pack_params(params)

    out = jax.block_until_ready(model_forward(x, packed))
    ref = jax.block_until_ready(reference_forward(x, params))

    assert out.shape == (B, 6), out.shape
    max_diff = float(jnp.max(jnp.abs(out - ref)))
    # Kernel dots use default MXU f32 precision (bf16 operand rounding) while
    # the reference runs at 'highest'; the compounded drift through the 8
    # recurrent steps is ~1e-3.  (precision=HIGHEST on the embedding and
    # recurrent dots would tighten this at negligible cost.)
    assert max_diff < 5e-3, f"max abs diff {max_diff}"
    print("KERNEL_OK")
</pallas_src>

<mosaic_0001>
module attributes {stable_mosaic.version = 11 : i64} {
  func.func @_model_kernel(%arg0: memref<64x1xi32, #tpu.memory_space<vmem>>, %arg1: memref<33x128xf32, #tpu.memory_space<vmem>>, %arg2: memref<392x512xf32, #tpu.memory_space<vmem>>, %arg3: memref<344x32xf32, #tpu.memory_space<vmem>>, %arg4: memref<8x6xf32, #tpu.memory_space<vmem>>) attributes {dimension_semantics = [], scalar_prefetch = 0 : i64, scratch_operands = 0 : i64, tpu.core_type = #tpu.core_type<tc>} {
    %c0 = arith.constant 0 : index
    %c0_0 = arith.constant 0 : index
    %0 = vector.load %arg0[%c0, %c0_0] : memref<64x1xi32, #tpu.memory_space<vmem>>, vector<64x1xi32>
    %1 = tpu.iota {dimensions = array<i32: 1>} : vector<64x33xi32>
    %2 = vector.broadcast %0 : vector<64x1xi32> to vector<64x33xi32>
    %3 = arith.cmpi eq, %2, %1 : vector<64x33xi32>
    %4 = arith.extui %3 : vector<64x33xi1> to vector<64x33xi32>
    %5 = arith.sitofp %4 : vector<64x33xi32> to vector<64x33xf32>
    %c0_1 = arith.constant 0 : index
    %c0_2 = arith.constant 0 : index
    %6 = vector.load %arg1[%c0_1, %c0_2] : memref<33x128xf32, #tpu.memory_space<vmem>>, vector<33x128xf32>
    %cst = arith.constant dense<0.000000e+00> : vector<64x128xf32>
    %7 = tpu.matmul %5, %6, %cst {dimension_numbers = #tpu.dot_dimension_numbers<[1], [0], [0], [1], [0, 0, 1, 1], [], []>} : vector<64x33xf32>, vector<33x128xf32>, vector<64x128xf32> -> vector<64x128xf32>
    %8 = tpu.iota {dimensions = array<i32: 0>} : vector<16x64xi32>
    %9 = tpu.iota {dimensions = array<i32: 1>} : vector<16x64xi32>
    %c15_i32 = arith.constant 15 : i32
    %10 = vector.broadcast %c15_i32 : i32 to vector<16x64xi32>
    %11 = arith.subi %10, %8 : vector<16x64xi32>
    %12 = arith.minsi %8, %11 : vector<16x64xi32>
    %c8_i32 = arith.constant 8 : i32
    %13 = vector.broadcast %c8_i32 : i32 to vector<16x64xi32>
    %14 = arith.muli %12, %13 : vector<16x64xi32>
    %15 = arith.cmpi sge, %9, %14 : vector<16x64xi32>
    %c8_i32_3 = arith.constant 8 : i32
    %16 = vector.broadcast %c8_i32_3 : i32 to vector<16x64xi32>
    %17 = arith.addi %14, %16 : vector<16x64xi32>
    %18 = arith.cmpi slt, %9, %17 : vector<16x64xi32>
    %19 = arith.andi %15, %18 : vector<16x64xi1>
    %20 = arith.extui %19 : vector<16x64xi1> to vector<16x64xi32>
    %21 = arith.sitofp %20 : vector<16x64xi32> to vector<16x64xf32>
    %cst_4 = arith.constant 1.250000e-01 : f32
    %22 = vector.broadcast %cst_4 : f32 to vector<16x64xf32>
    %23 = arith.mulf %21, %22 : vector<16x64xf32>
    %cst_5 = arith.constant dense<0.000000e+00> : vector<16x128xf32>
    %24 = tpu.matmul %23, %7, %cst_5 {dimension_numbers = #tpu.dot_dimension_numbers<[1], [0], [0], [1], [0, 0, 1, 1], [], []>} : vector<16x64xf32>, vector<64x128xf32>, vector<16x128xf32> -> vector<16x128xf32>
    %25 = vector.extract_strided_slice %24 {offsets = [0, 0], sizes = [8, 128], strides = [1, 1]} : vector<16x128xf32> to vector<8x128xf32>
    %26 = vector.extract_strided_slice %24 {offsets = [8, 0], sizes = [8, 128], strides = [1, 1]} : vector<16x128xf32> to vector<8x128xf32>
    %27 = tpu.concatenate %25, %26 in 1 : vector<8x128xf32>, vector<8x128xf32> -> vector<8x256xf32>
    %c0_6 = arith.constant 0 : index
    %c0_7 = arith.constant 0 : index
    %28 = vector.load %arg2[%c0_6, %c0_7] : memref<392x512xf32, #tpu.memory_space<vmem>>, vector<256x512xf32>
    %cst_8 = arith.constant dense<0.000000e+00> : vector<8x512xf32>
    %29 = tpu.matmul %27, %28, %cst_8 {dimension_numbers = #tpu.dot_dimension_numbers<[1], [0], [0], [1], [0, 0, 1, 1], [], []>} : vector<8x256xf32>, vector<256x512xf32>, vector<8x512xf32> -> vector<8x512xf32>
    %c256 = arith.constant 256 : index
    %c0_9 = arith.constant 0 : index
    %30 = vector.load %arg2[%c256, %c0_9] : memref<392x512xf32, #tpu.memory_space<vmem>>, vector<1x512xf32>
    %31 = vector.broadcast %30 : vector<1x512xf32> to vector<8x512xf32>
    %32 = arith.addf %29, %31 : vector<8x512xf32>
    %c264 = arith.constant 264 : index
    %c0_10 = arith.constant 0 : index
    %33 = vector.load %arg2[%c264, %c0_10] : memref<392x512xf32, #tpu.memory_space<vmem>>, vector<128x512xf32>
    %34 = tpu.iota {dimensions = array<i32: 0>} : vector<8x128xi32>
    %cst_11 = arith.constant 0.000000e+00 : f32
    %35 = vector.broadcast %cst_11 : f32 to vector<1x128xf32>
    %cst_12 = arith.constant 0.000000e+00 : f32
    %36 = vector.broadcast %cst_12 : f32 to vector<1x128xf32>
    %cst_13 = arith.constant 0.000000e+00 : f32
    %37 = vector.broadcast %cst_13 : f32 to vector<8x128xf32>
    %cst_14 = arith.constant 0.000000e+00 : f32
    %38 = vector.broadcast %cst_14 : f32 to vector<8x128xf32>
    %39 = vector.extract_strided_slice %32 {offsets = [0, 0], sizes = [1, 512], strides = [1, 1]} : vector<8x512xf32> to vector<1x512xf32>
    %cst_15 = arith.constant dense<0.000000e+00> : vector<1x512xf32>
    %40 = tpu.matmul %35, %33, %cst_15 {dimension_numbers = #tpu.dot_dimension_numbers<[1], [0], [0], [1], [0, 0, 1, 1], [], []>} : vector<1x128xf32>, vector<128x512xf32>, vector<1x512xf32> -> vector<1x512xf32>
    %41 = arith.addf %39, %40 : vector<1x512xf32>
    %42 = vector.extract_strided_slice %41 {offsets = [0, 0], sizes = [1, 384], strides = [1, 1]} : vector<1x512xf32> to vector<1x384xf32>
    %43 = arith.negf %42 : vector<1x384xf32>
    %44 = math.exp %43 : vector<1x384xf32>
    %cst_16 = arith.constant 1.000000e+00 : f32
    %45 = vector.broadcast %cst_16 : f32 to vector<1x384xf32>
    %46 = arith.addf %45, %44 : vector<1x384xf32>
    %47 = arith.divf %45, %46 : vector<1x384xf32>
    %48 = vector.extract_strided_slice %41 {offsets = [0, 384], sizes = [1, 128], strides = [1, 1]} : vector<1x512xf32> to vector<1x128xf32>
    %49 = math.tanh %48 : vector<1x128xf32>
    %50 = vector.extract_strided_slice %47 {offsets = [0, 0], sizes = [1, 128], strides = [1, 1]} : vector<1x384xf32> to vector<1x128xf32>
    %51 = vector.extract_strided_slice %47 {offsets = [0, 128], sizes = [1, 128], strides = [1, 1]} : vector<1x384xf32> to vector<1x128xf32>
    %52 = vector.extract_strided_slice %47 {offsets = [0, 256], sizes = [1, 128], strides = [1, 1]} : vector<1x384xf32> to vector<1x128xf32>
    %53 = arith.mulf %51, %36 : vector<1x128xf32>
    %54 = arith.mulf %50, %49 : vector<1x128xf32>
    %55 = arith.addf %53, %54 : vector<1x128xf32>
    %56 = math.tanh %55 : vector<1x128xf32>
    %57 = arith.mulf %52, %56 : vector<1x128xf32>
    %c0_i32 = arith.constant 0 : i32
    %58 = vector.broadcast %c0_i32 : i32 to vector<8x128xi32>
    %59 = arith.cmpi eq, %34, %58 : vector<8x128xi32>
    %60 = vector.shape_cast %57 : vector<1x128xf32> to vector<1x128xf32>
    %61 = vector.broadcast %60 : vector<1x128xf32> to vector<8x128xf32>
    %62 = arith.select %59, %61, %37 : vector<8x128xi1>, vector<8x128xf32>
    %c7_i32 = arith.constant 7 : i32
    %63 = vector.broadcast %c7_i32 : i32 to vector<8x128xi32>
    %64 = arith.cmpi eq, %34, %63 : vector<8x128xi32>
    %65 = vector.shape_cast %57 : vector<1x128xf32> to vector<1x128xf32>
    %66 = vector.broadcast %65 : vector<1x128xf32> to vector<8x128xf32>
    %67 = arith.select %64, %66, %38 : vector<8x128xi1>, vector<8x128xf32>
    %68 = vector.extract_strided_slice %32 {offsets = [1, 0], sizes = [1, 512], strides = [1, 1]} : vector<8x512xf32> to vector<1x512xf32>
    %cst_17 = arith.constant dense<0.000000e+00> : vector<1x512xf32>
    %69 = tpu.matmul %57, %33, %cst_17 {dimension_numbers = #tpu.dot_dimension_numbers<[1], [0], [0], [1], [0, 0, 1, 1], [], []>} : vector<1x128xf32>, vector<128x512xf32>, vector<1x512xf32> -> vector<1x512xf32>
    %70 = arith.addf %68, %69 : vector<1x512xf32>
    %71 = vector.extract_strided_slice %70 {offsets = [0, 0], sizes = [1, 384], strides = [1, 1]} : vector<1x512xf32> to vector<1x384xf32>
    %72 = arith.negf %71 : vector<1x384xf32>
    %73 = math.exp %72 : vector<1x384xf32>
    %cst_18 = arith.constant 1.000000e+00 : f32
    %74 = vector.broadcast %cst_18 : f32 to vector<1x384xf32>
    %75 = arith.addf %74, %73 : vector<1x384xf32>
    %76 = arith.divf %74, %75 : vector<1x384xf32>
    %77 = vector.extract_strided_slice %70 {offsets = [0, 384], sizes = [1, 128], strides = [1, 1]} : vector<1x512xf32> to vector<1x128xf32>
    %78 = math.tanh %77 : vector<1x128xf32>
    %79 = vector.extract_strided_slice %76 {offsets = [0, 0], sizes = [1, 128], strides = [1, 1]} : vector<1x384xf32> to vector<1x128xf32>
    %80 = vector.extract_strided_slice %76 {offsets = [0, 128], sizes = [1, 128], strides = [1, 1]} : vector<1x384xf32> to vector<1x128xf32>
    %81 = vector.extract_strided_slice %76 {offsets = [0, 256], sizes = [1, 128], strides = [1, 1]} : vector<1x384xf32> to vector<1x128xf32>
    %82 = arith.mulf %80, %55 : vector<1x128xf32>
    %83 = arith.mulf %79, %78 : vector<1x128xf32>
    %84 = arith.addf %82, %83 : vector<1x128xf32>
    %85 = math.tanh %84 : vector<1x128xf32>
    %86 = arith.mulf %81, %85 : vector<1x128xf32>
    %c1_i32 = arith.constant 1 : i32
    %87 = vector.broadcast %c1_i32 : i32 to vector<8x128xi32>
    %88 = arith.cmpi eq, %34, %87 : vector<8x128xi32>
    %89 = vector.shape_cast %86 : vector<1x128xf32> to vector<1x128xf32>
    %90 = vector.broadcast %89 : vector<1x128xf32> to vector<8x128xf32>
    %91 = arith.select %88, %90, %62 : vector<8x128xi1>, vector<8x128xf32>
    %c6_i32 = arith.constant 6 : i32
    %92 = vector.broadcast %c6_i32 : i32 to vector<8x128xi32>
    %93 = arith.cmpi eq, %34, %92 : vector<8x128xi32>
    %94 = vector.shape_cast %86 : vector<1x128xf32> to vector<1x128xf32>
    %95 = vector.broadcast %94 : vector<1x128xf32> to vector<8x128xf32>
    %96 = arith.select %93, %95, %67 : vector<8x128xi1>, vector<8x128xf32>
    %97 = vector.extract_strided_slice %32 {offsets = [2, 0], sizes = [1, 512], strides = [1, 1]} : vector<8x512xf32> to vector<1x512xf32>
    %cst_19 = arith.constant dense<0.000000e+00> : vector<1x512xf32>
    %98 = tpu.matmul %86, %33, %cst_19 {dimension_numbers = #tpu.dot_dimension_numbers<[1], [0], [0], [1], [0, 0, 1, 1], [], []>} : vector<1x128xf32>, vector<128x512xf32>, vector<1x512xf32> -> vector<1x512xf32>
    %99 = arith.addf %97, %98 : vector<1x512xf32>
    %100 = vector.extract_strided_slice %99 {offsets = [0, 0], sizes = [1, 384], strides = [1, 1]} : vector<1x512xf32> to vector<1x384xf32>
    %101 = arith.negf %100 : vector<1x384xf32>
    %102 = math.exp %101 : vector<1x384xf32>
    %cst_20 = arith.constant 1.000000e+00 : f32
    %103 = vector.broadcast %cst_20 : f32 to vector<1x384xf32>
    %104 = arith.addf %103, %102 : vector<1x384xf32>
    %105 = arith.divf %103, %104 : vector<1x384xf32>
    %106 = vector.extract_strided_slice %99 {offsets = [0, 384], sizes = [1, 128], strides = [1, 1]} : vector<1x512xf32> to vector<1x128xf32>
    %107 = math.tanh %106 : vector<1x128xf32>
    %108 = vector.extract_strided_slice %105 {offsets = [0, 0], sizes = [1, 128], strides = [1, 1]} : vector<1x384xf32> to vector<1x128xf32>
    %109 = vector.extract_strided_slice %105 {offsets = [0, 128], sizes = [1, 128], strides = [1, 1]} : vector<1x384xf32> to vector<1x128xf32>
    %110 = vector.extract_strided_slice %105 {offsets = [0, 256], sizes = [1, 128], strides = [1, 1]} : vector<1x384xf32> to vector<1x128xf32>
    %111 = arith.mulf %109, %84 : vector<1x128xf32>
    %112 = arith.mulf %108, %107 : vector<1x128xf32>
    %113 = arith.addf %111, %112 : vector<1x128xf32>
    %114 = math.tanh %113 : vector<1x128xf32>
    %115 = arith.mulf %110, %114 : vector<1x128xf32>
    %c2_i32 = arith.constant 2 : i32
    %116 = vector.broadcast %c2_i32 : i32 to vector<8x128xi32>
    %117 = arith.cmpi eq, %34, %116 : vector<8x128xi32>
    %118 = vector.shape_cast %115 : vector<1x128xf32> to vector<1x128xf32>
    %119 = vector.broadcast %118 : vector<1x128xf32> to vector<8x128xf32>
    %120 = arith.select %117, %119, %91 : vector<8x128xi1>, vector<8x128xf32>
    %c5_i32 = arith.constant 5 : i32
    %121 = vector.broadcast %c5_i32 : i32 to vector<8x128xi32>
    %122 = arith.cmpi eq, %34, %121 : vector<8x128xi32>
    %123 = vector.shape_cast %115 : vector<1x128xf32> to vector<1x128xf32>
    %124 = vector.broadcast %123 : vector<1x128xf32> to vector<8x128xf32>
    %125 = arith.select %122, %124, %96 : vector<8x128xi1>, vector<8x128xf32>
    %126 = vector.extract_strided_slice %32 {offsets = [3, 0], sizes = [1, 512], strides = [1, 1]} : vector<8x512xf32> to vector<1x512xf32>
    %cst_21 = arith.constant dense<0.000000e+00> : vector<1x512xf32>
    %127 = tpu.matmul %115, %33, %cst_21 {dimension_numbers = #tpu.dot_dimension_numbers<[1], [0], [0], [1], [0, 0, 1, 1], [], []>} : vector<1x128xf32>, vector<128x512xf32>, vector<1x512xf32> -> vector<1x512xf32>
    %128 = arith.addf %126, %127 : vector<1x512xf32>
    %129 = vector.extract_strided_slice %128 {offsets = [0, 0], sizes = [1, 384], strides = [1, 1]} : vector<1x512xf32> to vector<1x384xf32>
    %130 = arith.negf %129 : vector<1x384xf32>
    %131 = math.exp %130 : vector<1x384xf32>
    %cst_22 = arith.constant 1.000000e+00 : f32
    %132 = vector.broadcast %cst_22 : f32 to vector<1x384xf32>
    %133 = arith.addf %132, %131 : vector<1x384xf32>
    %134 = arith.divf %132, %133 : vector<1x384xf32>
    %135 = vector.extract_strided_slice %128 {offsets = [0, 384], sizes = [1, 128], strides = [1, 1]} : vector<1x512xf32> to vector<1x128xf32>
    %136 = math.tanh %135 : vector<1x128xf32>
    %137 = vector.extract_strided_slice %134 {offsets = [0, 0], sizes = [1, 128], strides = [1, 1]} : vector<1x384xf32> to vector<1x128xf32>
    %138 = vector.extract_strided_slice %134 {offsets = [0, 128], sizes = [1, 128], strides = [1, 1]} : vector<1x384xf32> to vector<1x128xf32>
    %139 = vector.extract_strided_slice %134 {offsets = [0, 256], sizes = [1, 128], strides = [1, 1]} : vector<1x384xf32> to vector<1x128xf32>
    %140 = arith.mulf %138, %113 : vector<1x128xf32>
    %141 = arith.mulf %137, %136 : vector<1x128xf32>
    %142 = arith.addf %140, %141 : vector<1x128xf32>
    %143 = math.tanh %142 : vector<1x128xf32>
    %144 = arith.mulf %139, %143 : vector<1x128xf32>
    %c3_i32 = arith.constant 3 : i32
    %145 = vector.broadcast %c3_i32 : i32 to vector<8x128xi32>
    %146 = arith.cmpi eq, %34, %145 : vector<8x128xi32>
    %147 = vector.shape_cast %144 : vector<1x128xf32> to vector<1x128xf32>
    %148 = vector.broadcast %147 : vector<1x128xf32> to vector<8x128xf32>
    %149 = arith.select %146, %148, %120 : vector<8x128xi1>, vector<8x128xf32>
    %c4_i32 = arith.constant 4 : i32
    %150 = vector.broadcast %c4_i32 : i32 to vector<8x128xi32>
    %151 = arith.cmpi eq, %34, %150 : vector<8x128xi32>
    %152 = vector.shape_cast %144 : vector<1x128xf32> to vector<1x128xf32>
    %153 = vector.broadcast %152 : vector<1x128xf32> to vector<8x128xf32>
    %154 = arith.select %151, %153, %125 : vector<8x128xi1>, vector<8x128xf32>
    %155 = vector.extract_strided_slice %32 {offsets = [4, 0], sizes = [1, 512], strides = [1, 1]} : vector<8x512xf32> to vector<1x512xf32>
    %cst_23 = arith.constant dense<0.000000e+00> : vector<1x512xf32>
    %156 = tpu.matmul %144, %33, %cst_23 {dimension_numbers = #tpu.dot_dimension_numbers<[1], [0], [0], [1], [0, 0, 1, 1], [], []>} : vector<1x128xf32>, vector<128x512xf32>, vector<1x512xf32> -> vector<1x512xf32>
    %157 = arith.addf %155, %156 : vector<1x512xf32>
    %158 = vector.extract_strided_slice %157 {offsets = [0, 0], sizes = [1, 384], strides = [1, 1]} : vector<1x512xf32> to vector<1x384xf32>
    %159 = arith.negf %158 : vector<1x384xf32>
    %160 = math.exp %159 : vector<1x384xf32>
    %cst_24 = arith.constant 1.000000e+00 : f32
    %161 = vector.broadcast %cst_24 : f32 to vector<1x384xf32>
    %162 = arith.addf %161, %160 : vector<1x384xf32>
    %163 = arith.divf %161, %162 : vector<1x384xf32>
    %164 = vector.extract_strided_slice %157 {offsets = [0, 384], sizes = [1, 128], strides = [1, 1]} : vector<1x512xf32> to vector<1x128xf32>
    %165 = math.tanh %164 : vector<1x128xf32>
    %166 = vector.extract_strided_slice %163 {offsets = [0, 0], sizes = [1, 128], strides = [1, 1]} : vector<1x384xf32> to vector<1x128xf32>
    %167 = vector.extract_strided_slice %163 {offsets = [0, 128], sizes = [1, 128], strides = [1, 1]} : vector<1x384xf32> to vector<1x128xf32>
    %168 = vector.extract_strided_slice %163 {offsets = [0, 256], sizes = [1, 128], strides = [1, 1]} : vector<1x384xf32> to vector<1x128xf32>
    %169 = arith.mulf %167, %142 : vector<1x128xf32>
    %170 = arith.mulf %166, %165 : vector<1x128xf32>
    %171 = arith.addf %169, %170 : vector<1x128xf32>
    %172 = math.tanh %171 : vector<1x128xf32>
    %173 = arith.mulf %168, %172 : vector<1x128xf32>
    %c4_i32_25 = arith.constant 4 : i32
    %174 = vector.broadcast %c4_i32_25 : i32 to vector<8x128xi32>
    %175 = arith.cmpi eq, %34, %174 : vector<8x128xi32>
    %176 = vector.shape_cast %173 : vector<1x128xf32> to vector<1x128xf32>
    %177 = vector.broadcast %176 : vector<1x128xf32> to vector<8x128xf32>
    %178 = arith.select %175, %177, %149 : vector<8x128xi1>, vector<8x128xf32>
    %c3_i32_26 = arith.constant 3 : i32
    %179 = vector.broadcast %c3_i32_26 : i32 to vector<8x128xi32>
    %180 = arith.cmpi eq, %34, %179 : vector<8x128xi32>
    %181 = vector.shape_cast %173 : vector<1x128xf32> to vector<1x128xf32>
    %182 = vector.broadcast %181 : vector<1x128xf32> to vector<8x128xf32>
    %183 = arith.select %180, %182, %154 : vector<8x128xi1>, vector<8x128xf32>
    %184 = vector.extract_strided_slice %32 {offsets = [5, 0], sizes = [1, 512], strides = [1, 1]} : vector<8x512xf32> to vector<1x512xf32>
    %cst_27 = arith.constant dense<0.000000e+00> : vector<1x512xf32>
    %185 = tpu.matmul %173, %33, %cst_27 {dimension_numbers = #tpu.dot_dimension_numbers<[1], [0], [0], [1], [0, 0, 1, 1], [], []>} : vector<1x128xf32>, vector<128x512xf32>, vector<1x512xf32> -> vector<1x512xf32>
    %186 = arith.addf %184, %185 : vector<1x512xf32>
    %187 = vector.extract_strided_slice %186 {offsets = [0, 0], sizes = [1, 384], strides = [1, 1]} : vector<1x512xf32> to vector<1x384xf32>
    %188 = arith.negf %187 : vector<1x384xf32>
    %189 = math.exp %188 : vector<1x384xf32>
    %cst_28 = arith.constant 1.000000e+00 : f32
    %190 = vector.broadcast %cst_28 : f32 to vector<1x384xf32>
    %191 = arith.addf %190, %189 : vector<1x384xf32>
    %192 = arith.divf %190, %191 : vector<1x384xf32>
    %193 = vector.extract_strided_slice %186 {offsets = [0, 384], sizes = [1, 128], strides = [1, 1]} : vector<1x512xf32> to vector<1x128xf32>
    %194 = math.tanh %193 : vector<1x128xf32>
    %195 = vector.extract_strided_slice %192 {offsets = [0, 0], sizes = [1, 128], strides = [1, 1]} : vector<1x384xf32> to vector<1x128xf32>
    %196 = vector.extract_strided_slice %192 {offsets = [0, 128], sizes = [1, 128], strides = [1, 1]} : vector<1x384xf32> to vector<1x128xf32>
    %197 = vector.extract_strided_slice %192 {offsets = [0, 256], sizes = [1, 128], strides = [1, 1]} : vector<1x384xf32> to vector<1x128xf32>
    %198 = arith.mulf %196, %171 : vector<1x128xf32>
    %199 = arith.mulf %195, %194 : vector<1x128xf32>
    %200 = arith.addf %198, %199 : vector<1x128xf32>
    %201 = math.tanh %200 : vector<1x128xf32>
    %202 = arith.mulf %197, %201 : vector<1x128xf32>
    %c5_i32_29 = arith.constant 5 : i32
    %203 = vector.broadcast %c5_i32_29 : i32 to vector<8x128xi32>
    %204 = arith.cmpi eq, %34, %203 : vector<8x128xi32>
    %205 = vector.shape_cast %202 : vector<1x128xf32> to vector<1x128xf32>
    %206 = vector.broadcast %205 : vector<1x128xf32> to vector<8x128xf32>
    %207 = arith.select %204, %206, %178 : vector<8x128xi1>, vector<8x128xf32>
    %c2_i32_30 = arith.constant 2 : i32
    %208 = vector.broadcast %c2_i32_30 : i32 to vector<8x128xi32>
    %209 = arith.cmpi eq, %34, %208 : vector<8x128xi32>
    %210 = vector.shape_cast %202 : vector<1x128xf32> to vector<1x128xf32>
    %211 = vector.broadcast %210 : vector<1x128xf32> to vector<8x128xf32>
    %212 = arith.select %209, %211, %183 : vector<8x128xi1>, vector<8x128xf32>
    %213 = vector.extract_strided_slice %32 {offsets = [6, 0], sizes = [1, 512], strides = [1, 1]} : vector<8x512xf32> to vector<1x512xf32>
    %cst_31 = arith.constant dense<0.000000e+00> : vector<1x512xf32>
    %214 = tpu.matmul %202, %33, %cst_31 {dimension_numbers = #tpu.dot_dimension_numbers<[1], [0], [0], [1], [0, 0, 1, 1], [], []>} : vector<1x128xf32>, vector<128x512xf32>, vector<1x512xf32> -> vector<1x512xf32>
    %215 = arith.addf %213, %214 : vector<1x512xf32>
    %216 = vector.extract_strided_slice %215 {offsets = [0, 0], sizes = [1, 384], strides = [1, 1]} : vector<1x512xf32> to vector<1x384xf32>
    %217 = arith.negf %216 : vector<1x384xf32>
    %218 = math.exp %217 : vector<1x384xf32>
    %cst_32 = arith.constant 1.000000e+00 : f32
    %219 = vector.broadcast %cst_32 : f32 to vector<1x384xf32>
    %220 = arith.addf %219, %218 : vector<1x384xf32>
    %221 = arith.divf %219, %220 : vector<1x384xf32>
    %222 = vector.extract_strided_slice %215 {offsets = [0, 384], sizes = [1, 128], strides = [1, 1]} : vector<1x512xf32> to vector<1x128xf32>
    %223 = math.tanh %222 : vector<1x128xf32>
    %224 = vector.extract_strided_slice %221 {offsets = [0, 0], sizes = [1, 128], strides = [1, 1]} : vector<1x384xf32> to vector<1x128xf32>
    %225 = vector.extract_strided_slice %221 {offsets = [0, 128], sizes = [1, 128], strides = [1, 1]} : vector<1x384xf32> to vector<1x128xf32>
    %226 = vector.extract_strided_slice %221 {offsets = [0, 256], sizes = [1, 128], strides = [1, 1]} : vector<1x384xf32> to vector<1x128xf32>
    %227 = arith.mulf %225, %200 : vector<1x128xf32>
    %228 = arith.mulf %224, %223 : vector<1x128xf32>
    %229 = arith.addf %227, %228 : vector<1x128xf32>
    %230 = math.tanh %229 : vector<1x128xf32>
    %231 = arith.mulf %226, %230 : vector<1x128xf32>
    %c6_i32_33 = arith.constant 6 : i32
    %232 = vector.broadcast %c6_i32_33 : i32 to vector<8x128xi32>
    %233 = arith.cmpi eq, %34, %232 : vector<8x128xi32>
    %234 = vector.shape_cast %231 : vector<1x128xf32> to vector<1x128xf32>
    %235 = vector.broadcast %234 : vector<1x128xf32> to vector<8x128xf32>
    %236 = arith.select %233, %235, %207 : vector<8x128xi1>, vector<8x128xf32>
    %c1_i32_34 = arith.constant 1 : i32
    %237 = vector.broadcast %c1_i32_34 : i32 to vector<8x128xi32>
    %238 = arith.cmpi eq, %34, %237 : vector<8x128xi32>
    %239 = vector.shape_cast %231 : vector<1x128xf32> to vector<1x128xf32>
    %240 = vector.broadcast %239 : vector<1x128xf32> to vector<8x128xf32>
    %241 = arith.select %238, %240, %212 : vector<8x128xi1>, vector<8x128xf32>
    %242 = vector.extract_strided_slice %32 {offsets = [7, 0], sizes = [1, 512], strides = [1, 1]} : vector<8x512xf32> to vector<1x512xf32>
    %cst_35 = arith.constant dense<0.000000e+00> : vector<1x512xf32>
    %243 = tpu.matmul %231, %33, %cst_35 {dimension_numbers = #tpu.dot_dimension_numbers<[1], [0], [0], [1], [0, 0, 1, 1], [], []>} : vector<1x128xf32>, vector<128x512xf32>, vector<1x512xf32> -> vector<1x512xf32>
    %244 = arith.addf %242, %243 : vector<1x512xf32>
    %245 = vector.extract_strided_slice %244 {offsets = [0, 0], sizes = [1, 384], strides = [1, 1]} : vector<1x512xf32> to vector<1x384xf32>
    %246 = arith.negf %245 : vector<1x384xf32>
    %247 = math.exp %246 : vector<1x384xf32>
    %cst_36 = arith.constant 1.000000e+00 : f32
    %248 = vector.broadcast %cst_36 : f32 to vector<1x384xf32>
    %249 = arith.addf %248, %247 : vector<1x384xf32>
    %250 = arith.divf %248, %249 : vector<1x384xf32>
    %251 = vector.extract_strided_slice %244 {offsets = [0, 384], sizes = [1, 128], strides = [1, 1]} : vector<1x512xf32> to vector<1x128xf32>
    %252 = math.tanh %251 : vector<1x128xf32>
    %253 = vector.extract_strided_slice %250 {offsets = [0, 0], sizes = [1, 128], strides = [1, 1]} : vector<1x384xf32> to vector<1x128xf32>
    %254 = vector.extract_strided_slice %250 {offsets = [0, 128], sizes = [1, 128], strides = [1, 1]} : vector<1x384xf32> to vector<1x128xf32>
    %255 = vector.extract_strided_slice %250 {offsets = [0, 256], sizes = [1, 128], strides = [1, 1]} : vector<1x384xf32> to vector<1x128xf32>
    %256 = arith.mulf %254, %229 : vector<1x128xf32>
    %257 = arith.mulf %253, %252 : vector<1x128xf32>
    %258 = arith.addf %256, %257 : vector<1x128xf32>
    %259 = math.tanh %258 : vector<1x128xf32>
    %260 = arith.mulf %255, %259 : vector<1x128xf32>
    %c7_i32_37 = arith.constant 7 : i32
    %261 = vector.broadcast %c7_i32_37 : i32 to vector<8x128xi32>
    %262 = arith.cmpi eq, %34, %261 : vector<8x128xi32>
    %263 = vector.shape_cast %260 : vector<1x128xf32> to vector<1x128xf32>
    %264 = vector.broadcast %263 : vector<1x128xf32> to vector<8x128xf32>
    %265 = arith.select %262, %264, %236 : vector<8x128xi1>, vector<8x128xf32>
    %c0_i32_38 = arith.constant 0 : i32
    %266 = vector.broadcast %c0_i32_38 : i32 to vector<8x128xi32>
    %267 = arith.cmpi eq, %34, %266 : vector<8x128xi32>
    %268 = vector.shape_cast %260 : vector<1x128xf32> to vector<1x128xf32>
    %269 = vector.broadcast %268 : vector<1x128xf32> to vector<8x128xf32>
    %270 = arith.select %267, %269, %241 : vector<8x128xi1>, vector<8x128xf32>
    %271 = math.tanh %265 : vector<8x128xf32>
    %272 = math.tanh %270 : vector<8x128xf32>
    %c0_39 = arith.constant 0 : index
    %c0_40 = arith.constant 0 : index
    %273 = vector.load %arg3[%c0_39, %c0_40] : memref<344x32xf32, #tpu.memory_space<vmem>>, vector<128x32xf32>
    %cst_41 = arith.constant dense<0.000000e+00> : vector<8x32xf32>
    %274 = tpu.matmul %271, %273, %cst_41 {dimension_numbers = #tpu.dot_dimension_numbers<[1], [0], [0], [1], [0, 0, 1, 1], [], []>} : vector<8x128xf32>, vector<128x32xf32>, vector<8x32xf32> -> vector<8x32xf32>
    %c128 = arith.constant 128 : index
    %c0_42 = arith.constant 0 : index
    %275 = vector.load %arg3[%c128, %c0_42] : memref<344x32xf32, #tpu.memory_space<vmem>>, vector<128x32xf32>
    %cst_43 = arith.constant dense<0.000000e+00> : vector<8x32xf32>
    %276 = tpu.matmul %272, %275, %cst_43 {dimension_numbers = #tpu.dot_dimension_numbers<[1], [0], [0], [1], [0, 0, 1, 1], [], []>} : vector<8x128xf32>, vector<128x32xf32>, vector<8x32xf32> -> vector<8x32xf32>
    %277 = arith.addf %274, %276 : vector<8x32xf32>
    %c256_44 = arith.constant 256 : index
    %c0_45 = arith.constant 0 : index
    %278 = vector.load %arg3[%c256_44, %c0_45] : memref<344x32xf32, #tpu.memory_space<vmem>>, vector<1x32xf32>
    %279 = vector.broadcast %278 : vector<1x32xf32> to vector<8x32xf32>
    %280 = arith.addf %277, %279 : vector<8x32xf32>
    %cst_46 = arith.constant 0.000000e+00 : f32
    %281 = vector.broadcast %cst_46 : f32 to vector<8x32xf32>
    %282 = arith.maximumf %280, %281 : vector<8x32xf32>
    %c264_47 = arith.constant 264 : index
    %c0_48 = arith.constant 0 : index
    %283 = vector.load %arg3[%c264_47, %c0_48] : memref<344x32xf32, #tpu.memory_space<vmem>>, vector<32x32xf32>
    %cst_49 = arith.constant dense<0.000000e+00> : vector<8x32xf32>
    %284 = tpu.matmul %282, %283, %cst_49 {dimension_numbers = #tpu.dot_dimension_numbers<[1], [0], [0], [1], [0, 0, 1, 1], [], []>} : vector<8x32xf32>, vector<32x32xf32>, vector<8x32xf32> -> vector<8x32xf32>
    %c296 = arith.constant 296 : index
    %c0_50 = arith.constant 0 : index
    %285 = vector.load %arg3[%c296, %c0_50] : memref<344x32xf32, #tpu.memory_space<vmem>>, vector<1x32xf32>
    %286 = vector.broadcast %285 : vector<1x32xf32> to vector<8x32xf32>
    %287 = arith.addf %284, %286 : vector<8x32xf32>
    %cst_51 = arith.constant 0.000000e+00 : f32
    %288 = vector.broadcast %cst_51 : f32 to vector<8x32xf32>
    %289 = arith.maximumf %287, %288 : vector<8x32xf32>
    %c304 = arith.constant 304 : index
    %c0_52 = arith.constant 0 : index
    %290 = vector.load %arg3[%c304, %c0_52] : memref<344x32xf32, #tpu.memory_space<vmem>>, vector<32x32xf32>
    %cst_53 = arith.constant dense<0.000000e+00> : vector<8x32xf32>
    %291 = tpu.matmul %289, %290, %cst_53 {dimension_numbers = #tpu.dot_dimension_numbers<[1], [0], [0], [1], [0, 0, 1, 1], [], []>} : vector<8x32xf32>, vector<32x32xf32>, vector<8x32xf32> -> vector<8x32xf32>
    %c336 = arith.constant 336 : index
    %c0_54 = arith.constant 0 : index
    %292 = vector.load %arg3[%c336, %c0_54] : memref<344x32xf32, #tpu.memory_space<vmem>>, vector<1x32xf32>
    %293 = vector.broadcast %292 : vector<1x32xf32> to vector<8x32xf32>
    %294 = arith.addf %291, %293 : vector<8x32xf32>
    %295 = arith.negf %294 : vector<8x32xf32>
    %296 = math.exp %295 : vector<8x32xf32>
    %cst_55 = arith.constant 1.000000e+00 : f32
    %297 = vector.broadcast %cst_55 : f32 to vector<8x32xf32>
    %298 = arith.addf %297, %296 : vector<8x32xf32>
    %299 = arith.divf %297, %298 : vector<8x32xf32>
    %300 = vector.extract_strided_slice %299 {offsets = [0, 0], sizes = [8, 6], strides = [1, 1]} : vector<8x32xf32> to vector<8x6xf32>
    %c0_56 = arith.constant 0 : index
    %c0_57 = arith.constant 0 : index
    %301 = vector.load %arg4[%c0_56, %c0_57] : memref<8x6xf32, #tpu.memory_space<vmem>>, vector<8x6xf32>
    tpu.vector_store %arg4[%c0_56, %c0_57], %300 {strides = array<i32>} : memref<8x6xf32, #tpu.memory_space<vmem>>, vector<8x6xf32>,
    return
  }
}

</mosaic_0001>

<bundles_post_ra>
// kernel: model_forward.1
= control target key start
LH: loop header
LB: loop body
LE: loop exit
PB: predicated region body
PF: predicated region fallthrough
CT: control target
= control target key end

     0   :  { %9 = vsyncpa [#allocation3], 0  ;;  %s4573_s0 = inlined_call_operand.vmem [shape: s32[64,1], index: 0, kind: input, shape index: {}]   ;;  %s4574_s1 = inlined_call_operand.vmem [shape: f32[33,128], index: 1, kind: input, shape index: {}]   ;;  %s4575_s2 = inlined_call_operand.hbm [shape: f32[392,512], index: 2, kind: input, shape index: {}]   ;;  %s4576_s3 = inlined_call_operand.vmem [shape: f32[344,32], index: 3, kind: input, shape index: {}]   ;;  %s4577_s4 = inlined_call_operand.hbm [shape: f32[8,6], index: 4, kind: output, shape index: {}]  }
   0x1   :  { %10 = vsyncpa [#allocation4], 0  ;;  %s3771_s15 = smov [#allocation2]   ;;  %s3723_s19 = scalar_lea.hbm %s4575_s2, 25088 }
   0x2   :  { %s20_s16 = sshll.u32 %s3771_s15, 4  ;;  %p3724_p0 = scmp.ne.s32.totalorder %s4575_s2, %s3723_s19  ;;  %s21_s16 = int_to_ptr.vmem [resolvable:$true] %s20_s16 }
   0x3   :  { %p3727_p1 = scmp.lt.u32.totalorder %s3723_s19, %s4575_s2 }
   0x5   :  { %p3729_p2 = pnand %p3727_p1, %p3724_p0 }
   0x7   :  { %3732 = shalt.err (!%p3729_p2)
}
   0x8   :  { %s3733_s24 = scalar_lea.vmem %s21_s16, 25088  ;;  %p3738_p4 = scmp.lt.s32.totalorder %s21_s16, %s21_s16 }
   0x9   :  { %p3734_p3 = scmp.ne.s32.totalorder %s21_s16, %s3733_s24  ;;  %p3739_p5 = scmp.lt.s32.totalorder %s3733_s24, %s3733_s24 }
   0xb   :  { %p3740_p6 = por %p3739_p5, %p3738_p4 }
   0xd   :  { %p3741_p7 = pnand %p3740_p6, %p3734_p3 }
   0xf   :  { %3744 = shalt.err (!%p3741_p7)
}
  0x10   :  { %s3772_s25 = smov 512   ;;  %s3773_s26 = smov 32  }
  0x11   :  { %26 = dma.hbm_to_vmem [thread:$0]  %s4575_s2, 25088, %s21_s16, [#allocation3], %s3772_s25, %s3772_s25, %s3773_s26  }
  0x12   :  { %3767 = dma.done.wait [#allocation3], 25088  }
  0x13   :  { %3768 = vsyncadd [#allocation3], 4294942208  ;;  %v3774_v0 = vmov 0   ;;  %v34_v1 = vld [vmem:[%s4573_s0 + $0x10] sm:$0xff]  ;;  %v32_v2 = vld [vmem:[%s4573_s0] sm:$0xff]  ;;  %vm120_vm0 = vcmask 1040384   ;;  %v40_v16 = vlaneseq }
  0x14   :  { %3586 = vset.pattern.permute.xlu1 %v3774_v0  ;;  %3585 = vset.pattern.permute.xlu0 %v3774_v0  ;;  %v35_v3 = vld [vmem:[%s4573_s0 + $0x18] sm:$0xff]  ;;  %v33_v4 = vld [vmem:[%s4573_s0 + $0x8] sm:$0xff]  ;;  %v90_v5 = vld [vmem:[%s4574_s1] sm:$0xff]  ;;  %vm95_vm1 = vcmask 269312   ;;  %v3775_v20 = vmov 0.0   ;;  %vm254_vm13 = vcmask 523264  }
  0x15   :  { %49 = vperm.xlu1 %3586, %v34_v1   ;;  %43 = vperm.xlu0 %3585, %v32_v2   ;;  %v91_v6 = vld [vmem:[%s4574_s1 + $0x8] sm:$0xff]  ;;  %v92_v7 = vld [vmem:[%s4574_s1 + $0x10] sm:$0xff]  ;;  %v93_v8 = vld [vmem:[%s4574_s1 + $0x18] sm:$0xff]  ;;  %v3855_v17 = vand.u32 127, %v40_v16  ;;  %v3881_v35 = vshrl.u32 %v40_v16, 7  ;;  %s3778_s27 = smov [#allocation5]  }
  0x16   :  { %v2853_v9 = vpack.c.bf16 %v91_v6, %v90_v5  ;;  %v2857_v10 = vpack.c.bf16 %v93_v8, %v92_v7  ;;  %v37_v11 = vld [vmem:[%s4573_s0 + $0x28] sm:$0xff]  ;;  %v36_v12 = vld [vmem:[%s4573_s0 + $0x20] sm:$0xff]  ;;  %v39_v14 = vld [vmem:[%s4573_s0 + $0x38] sm:$0xff] }
  0x17   :  { %v94_v13 = vld [vmem:[%s4574_s1 + $0x20] sm:$0x1]  ;;  %v38_v15 = vld [vmem:[%s4573_s0 + $0x30] sm:$0xff]  ;;  %v238_v36 = vmul.u32 8, %v3881_v35  ;;  %v337_v40 = vld [vmem:[#allocation2 + $0x8] sm:$0xff]  ;;  %s2593_s0 = sshll.u32 %s3778_s27, 4  ;;  %s2594_s0 = int_to_ptr.vmem [resolvable:$true] %s2593_s0 }
  0x18   :  { %2854 = vmatprep.subr.bf16.mxu0 %v2853_v9  ;;  %v341_v41 = vld [vmem:[#allocation2 + $0x28] sm:$0xff]  ;;  %v336_v43 = vld [vmem:[#allocation2] sm:$0xff]  ;;  %s3745_s1 = scalar_lea.vmem %s2594_s0, 128  ;;  %p3750_p9 = scmp.lt.s32.totalorder %s2594_s0, %s2594_s0 }
  0x19   :  { %52 = vperm.xlu1 %3586, %v35_v3   ;;  %46 = vperm.xlu0 %3585, %v33_v4   ;;  %v242_v37 = vadd.s32 8, %v238_v36  ;;  %vm240_vm10 = vcmp.ge.s32.totalorder %v3855_v17, %v238_v36  ;;  %v2877_v42 = vpack.c.bf16 %v341_v41, %v337_v40  ;;  %v340_v44 = vld [vmem:[#allocation2 + $0x20] sm:$0xff]  ;;  %v345_v46 = vld [vmem:[#allocation2 + $0x48] sm:$0xff]  ;;  %p3746_p8 = scmp.ne.s32.totalorder %s2594_s0, %s3745_s1  ;;  %p3751_p10 = scmp.lt.s32.totalorder %s3745_s1, %s3745_s1 }
  0x1a   :  { %2856 = vmatpush3.bf16.msra.mxu0 %v2853_v9  ;;  %v2879_v45 = vpack.c.bf16 %v340_v44, %v336_v43  ;;  %v349_v47 = vld [vmem:[#allocation2 + $0x68] sm:$0xff]  ;;  %v344_v49 = vld [vmem:[#allocation2 + $0x40] sm:$0xff] }
  0x1b   :  { %2858 = vmatprep.subr.bf16.mxu0 %v2857_v10  ;;  %vm244_vm11 = vcmp.lt.s32.totalorder %v3855_v17, %v242_v37  ;;  %v2881_v48 = vpack.c.bf16 %v349_v47, %v345_v46  ;;  %v348_v50 = vld [vmem:[#allocation2 + $0x60] sm:$0xff]  ;;  %v353_v52 = vld [vmem:[#allocation2 + $0x88] sm:$0xff]  ;;  %p3752_p11 = por %p3751_p10, %p3750_p9 }
  0x1c   :  { %vm246_vm12 = vmand %vm240_vm10, %vm244_vm11  ;;  %v2883_v51 = vpack.c.bf16 %v348_v50, %v344_v49  ;;  %v357_v53 = vld [vmem:[#allocation2 + $0xa8] sm:$0xff]  ;;  %v352_v55 = vld [vmem:[#allocation2 + $0x80] sm:$0xff]  ;;  %vm2422_vm10 = vcmask 261120   ;;  %vm2585_vm11 = vcmask 48128  }
  0x1d   :  { %58 = vperm.xlu1 %3586, %v37_v11   ;;  %55 = vperm.xlu0 %3585, %v36_v12   ;;  %v2619_v38 = vsel %vm246_vm12, 1.0, %v3775_v20  ;;  %v2885_v54 = vpack.c.bf16 %v357_v53, %v353_v52  ;;  %v356_v56 = vld [vmem:[#allocation2 + $0xa0] sm:$0xff]  ;;  %v361_v58 = vld [vmem:[#allocation2 + $0xc8] sm:$0xff]  ;;  %p3753_p12 = pnand %p3752_p11, %p3746_p8 }
  0x1e   :  { %2860 = vmatpush3.bf16.msra.mxu0 %v2857_v10  ;;  %v252_v39 = vmul.f32 0.125, %v2619_v38  ;;  %v2887_v57 = vpack.c.bf16 %v356_v56, %v352_v55  ;;  %v365_v59 = vld [vmem:[#allocation2 + $0xe8] sm:$0xff]  ;;  %v360_v61 = vld [vmem:[#allocation2 + $0xc0] sm:$0xff] }
  0x1f   :  { %2728 = vmatprep.subr.msk.mxu0 %vm120_vm0, %v94_v13  ;;  %v2889_v60 = vpack.c.bf16 %v365_v59, %v361_v58  ;;  %v364_v62 = vld [vmem:[#allocation2 + $0xe0] sm:$0xff]  ;;  %v369_v0 = vld [vmem:[#allocation2 + $0x108] sm:$0xff] }
  0x20   :  { %2758 = vmatprep.mubr.msk.f32.mxu1 %vm254_vm13, %v252_v39  ;;  %v2891_v63 = vpack.c.bf16 %v364_v62, %v360_v61  ;;  %v373_v1 = vld [vmem:[#allocation2 + $0x128] sm:$0xff]  ;;  %v368_v3 = vld [vmem:[#allocation2 + $0x100] sm:$0xff] }
  0x21   :  { %64 = vperm.xlu1 %3586, %v39_v14   ;;  %61 = vperm.xlu0 %3585, %v38_v15   ;;  %v2893_v2 = vpack.c.bf16 %v373_v1, %v369_v0  ;;  %v372_v4 = vld [vmem:[#allocation2 + $0x120] sm:$0xff]  ;;  %v377_v6 = vld [vmem:[#allocation2 + $0x148] sm:$0xff] }
  0x22   :  { %2729 = vmatpush3.msk.msra.mxu0 %vm120_vm0, %v94_v13  ;;  %v2895_v5 = vpack.c.bf16 %v372_v4, %v368_v3  ;;  %v381_v7 = vld [vmem:[#allocation2 + $0x168] sm:$0xff]  ;;  %v376_v9 = vld [vmem:[#allocation2 + $0x140] sm:$0xff] }
  0x23   :  { %2878 = vmatprep.subr.bf16.mxu0 %v2877_v42  ;;  %v2897_v8 = vpack.c.bf16 %v381_v7, %v377_v6  ;;  %v380_v10 = vld [vmem:[#allocation2 + $0x160] sm:$0xff]  ;;  %v385_v12 = vld [vmem:[#allocation2 + $0x188] sm:$0xff] }
  0x24   :  { %v2899_v11 = vpack.c.bf16 %v380_v10, %v376_v9  ;;  %v389_v13 = vld [vmem:[#allocation2 + $0x1a8] sm:$0xff]  ;;  %v384_v15 = vld [vmem:[#allocation2 + $0x180] sm:$0xff] }
  0x25   :  { %v2901_v14 = vpack.c.bf16 %v389_v13, %v385_v12  ;;  %v388_v16 = vld [vmem:[#allocation2 + $0x1a0] sm:$0xff]  ;;  %v417_v39 = vld [vmem:[#allocation2 + $0x288] sm:$0xff] }
  0x26   :  { %v408_v36 = vld [vmem:[#allocation2 + $0x240] sm:$0xff]  ;;  %v421_v40 = vld [vmem:[#allocation2 + $0x2a8] sm:$0xff] }
  0x27   :  { %v412_v37 = vld [vmem:[#allocation2 + $0x260] sm:$0xff]  ;;  %v2917_v41 = vpack.c.bf16 %v421_v40, %v417_v39  ;;  %v429_v46 = vld [vmem:[#allocation2 + $0x2e8] sm:$0xff]  ;;  %v346_v40 = vld [vmem:[#allocation2 + $0x50] sm:$0xff] }
  0x28   :  { %v2915_v38 = vpack.c.bf16 %v412_v37, %v408_v36  ;;  %v416_v42 = vld [vmem:[#allocation2 + $0x280] sm:$0xff]  ;;  %v437_v52 = vld [vmem:[#allocation2 + $0x328] sm:$0xff]  ;;  %v347_v36 = vld [vmem:[#allocation2 + $0x58] sm:$0xff] }
  0x29   :  { %v420_v43 = vld [vmem:[#allocation2 + $0x2a0] sm:$0xff]  ;;  %v445_v58 = vld [vmem:[#allocation2 + $0x368] sm:$0xff] }
  0x2a   :  { %v2919_v44 = vpack.c.bf16 %v420_v43, %v416_v42  ;;  %v428_v49 = vld [vmem:[#allocation2 + $0x2e0] sm:$0xff]  ;;  %v453_v0 = vld [vmem:[#allocation2 + $0x3a8] sm:$0xff]  ;;  %v355_v42 = vld [vmem:[#allocation2 + $0x98] sm:$0xff] }
  0x2b   :  { %v436_v55 = vld [vmem:[#allocation2 + $0x320] sm:$0xff]  ;;  %v461_v6 = vld [vmem:[#allocation2 + $0x3e8] sm:$0xff]  ;;  %v359_v43 = vld [vmem:[#allocation2 + $0xb8] sm:$0xff] }
  0x2c   :  { %v444_v61 = vld [vmem:[#allocation2 + $0x360] sm:$0xff] }
  0x2d   :  { %v452_v3 = vld [vmem:[#allocation2 + $0x3a0] sm:$0xff] }
  0x2e   :  { %v460_v9 = vld [vmem:[#allocation2 + $0x3e0] sm:$0xff] }
  0x94   :  { %v50_v18 = vpop.permute.xlu1 %49  ;;  %v44_v19 = vpop.permute.xlu0 %43 }
  0x95   :  { %vm66_vm2 = vcmp.eq.s32.totalorder %v44_v19, %v3855_v17  ;;  %vm68_vm3 = vcmp.eq.s32.totalorder %v50_v18, %v3855_v17  ;;  %v2903_v18 = vpack.c.bf16 %v388_v16, %v384_v15  ;;  %v393_v19 = vld [vmem:[#allocation2 + $0x1c8] sm:$0xff] }
  0x96   :  { %v2602_v21 = vsel %vm66_vm2, 1.0, %v3775_v20  ;;  %v2604_v24 = vsel %vm68_vm3, 1.0, %v3775_v20  ;;  %vm869_vm2 = vcmp.eq.s32.totalorder %v3881_v35, 7  ;;  %vm1056_vm3 = vcmp.eq.s32.totalorder %v3881_v35, 1 }
  0x97   :  { %2730 = vmatprep.mubr.msk.f32.mxu0 %vm95_vm1, %v2602_v21  ;;  %v397_v21 = vld [vmem:[#allocation2 + $0x1e8] sm:$0xff] }
  0x98   :  { %v53_v22 = vpop.permute.xlu1 %52  ;;  %v47_v23 = vpop.permute.xlu0 %46 }
  0x99   :  { %vm67_vm4 = vcmp.eq.s32.totalorder %v47_v23, %v3855_v17  ;;  %vm69_vm5 = vcmp.eq.s32.totalorder %v53_v22, %v3855_v17  ;;  %v2905_v22 = vpack.c.bf16 %v397_v21, %v393_v19  ;;  %v392_v23 = vld [vmem:[#allocation2 + $0x1c0] sm:$0xff] }
  0x9a   :  { %v2603_v25 = vsel %vm67_vm4, 1.0, %v3775_v20  ;;  %v2605_v28 = vsel %vm69_vm5, 1.0, %v3775_v20  ;;  %vm1062_vm4 = vcmp.eq.s32.totalorder %v3881_v35, 6  ;;  %vm1252_vm5 = vcmp.eq.s32.totalorder %v3881_v35, 2 }
  0x9b   :  { %2731 = vmatmul.mubr.msk.f32.vlgmr.msra.gmra.mrb[0].mxu0 %vm95_vm1, %v2603_v25 }
  0x9c   :  { %v59_v26 = vpop.permute.xlu1 %58  ;;  %2733 = vmatprep.mubr.msk.f32.mxu0 %vm95_vm1, %v2604_v24  ;;  %v56_v27 = vpop.permute.xlu0 %55  ;;  %2880 = vmatpush1.bf16.msra.mxu0 %v2879_v45  ;;  %v396_v24 = vld [vmem:[#allocation2 + $0x1e0] sm:$0xff]  ;;  %v425_v45 = vld [vmem:[#allocation2 + $0x2c8] sm:$0xff] }
  0x9d   :  { %vm70_vm6 = vcmp.eq.s32.totalorder %v56_v27, %v3855_v17  ;;  %vm71_vm7 = vcmp.eq.s32.totalorder %v59_v26, %v3855_v17  ;;  %2882 = vmatprep.subr.bf16.mxu0 %v2881_v48  ;;  %v2907_v25 = vpack.c.bf16 %v396_v24, %v392_v23  ;;  %v401_v26 = vld [vmem:[#allocation2 + $0x208] sm:$0xff]  ;;  %v2921_v47 = vpack.c.bf16 %v429_v46, %v425_v45  ;;  %v424_v48 = vld [vmem:[#allocation2 + $0x2c0] sm:$0xff]  ;;  %v354_v46 = vld [vmem:[#allocation2 + $0x90] sm:$0xff] }
  0x9e   :  { %v2606_v29 = vsel %vm70_vm6, 1.0, %v3775_v20  ;;  %v2607_v32 = vsel %vm71_vm7, 1.0, %v3775_v20  ;;  %v405_v27 = vld [vmem:[#allocation2 + $0x228] sm:$0xff]  ;;  %v2923_v50 = vpack.c.bf16 %v428_v49, %v424_v48  ;;  %v2949_v45 = vpack.c.bf16 %v359_v43, %v355_v42  ;;  %v363_v48 = vld [vmem:[#allocation2 + $0xd8] sm:$0xff] }
  0x9f   :  { %2734 = vmatmul.mubr.msk.f32.gmra.mrb[2].mxu0 %vm95_vm1, %v2605_v28  ;;  %v2909_v28 = vpack.c.bf16 %v405_v27, %v401_v26  ;;  %v339_v26 = vld [vmem:[#allocation2 + $0x18] sm:$0xff]  ;;  %vm1258_vm6 = vcmp.eq.s32.totalorder %v3881_v35, 5  ;;  %vm1448_vm7 = vcmp.eq.s32.totalorder %v3881_v35, 3 }
  0xa0   :  { %v65_v30 = vpop.permute.xlu1 %64  ;;  %2736 = vmatprep.mubr.msk.f32.mxu0 %vm95_vm1, %v2606_v29  ;;  %v62_v31 = vpop.permute.xlu0 %61  ;;  %2884 = vmatpush1.bf16.msra.mxu0 %v2883_v51  ;;  %v400_v29 = vld [vmem:[#allocation2 + $0x200] sm:$0xff]  ;;  %v433_v51 = vld [vmem:[#allocation2 + $0x308] sm:$0xff]  ;;  %v343_v27 = vld [vmem:[#allocation2 + $0x38] sm:$0xff] }
  0xa1   :  { %vm72_vm8 = vcmp.eq.s32.totalorder %v62_v31, %v3855_v17  ;;  %vm73_vm9 = vcmp.eq.s32.totalorder %v65_v30, %v3855_v17  ;;  %2886 = vmatprep.subr.bf16.mxu0 %v2885_v54  ;;  %v404_v30 = vld [vmem:[#allocation2 + $0x220] sm:$0xff]  ;;  %v2925_v53 = vpack.c.bf16 %v437_v52, %v433_v51  ;;  %v367_v49 = vld [vmem:[#allocation2 + $0xf8] sm:$0xff]  ;;  %v362_v52 = vld [vmem:[#allocation2 + $0xd0] sm:$0xff] }
  0xa2   :  { %v2608_v33 = vsel %vm72_vm8, 1.0, %v3775_v20  ;;  %v2609_v34 = vsel %vm73_vm9, 1.0, %v3775_v20  ;;  %v2911_v31 = vpack.c.bf16 %v404_v30, %v400_v29  ;;  %v432_v54 = vld [vmem:[#allocation2 + $0x300] sm:$0xff]  ;;  %v2953_v51 = vpack.c.bf16 %v367_v49, %v363_v48 }
  0xa3   :  { %2737 = vmatmul.mubr.msk.f32.gmra.mrb[4].mxu0 %vm95_vm1, %v2607_v32  ;;  %v409_v32 = vld [vmem:[#allocation2 + $0x248] sm:$0xff]  ;;  %v2927_v56 = vpack.c.bf16 %v436_v55, %v432_v54  ;;  %v371_v54 = vld [vmem:[#allocation2 + $0x118] sm:$0xff]  ;;  %vm1454_vm8 = vcmp.eq.s32.totalorder %v3881_v35, 4  ;;  %vm3777_vm9 = vmmov 0  }
  0xa4   :  { %2739 = vmatprep.mubr.msk.f32.mxu0 %vm95_vm1, %v2608_v33  ;;  %2888 = vmatpush1.bf16.msra.mxu0 %v2887_v57  ;;  %v413_v33 = vld [vmem:[#allocation2 + $0x268] sm:$0xff]  ;;  %v375_v55 = vld [vmem:[#allocation2 + $0x138] sm:$0xff] }
  0xa5   :  { %2890 = vmatprep.subr.bf16.mxu0 %v2889_v60  ;;  %v441_v57 = vld [vmem:[#allocation2 + $0x348] sm:$0xff]  ;;  %v440_v60 = vld [vmem:[#allocation2 + $0x340] sm:$0xff] }
  0xa6   :  { %v2929_v59 = vpack.c.bf16 %v445_v58, %v441_v57  ;;  %v2931_v62 = vpack.c.bf16 %v444_v61, %v440_v60  ;;  %v2957_v57 = vpack.c.bf16 %v375_v55, %v371_v54  ;;  %v370_v58 = vld [vmem:[#allocation2 + $0x110] sm:$0xff]  ;;  %v379_v60 = vld [vmem:[#allocation2 + $0x158] sm:$0xff] }
  0xa7   :  { %2740 = vmatmul.mubr.msk.f32.gmra.mrb[6].mxu0 %vm95_vm1, %v2609_v34  ;;  %v2913_v34 = vpack.c.bf16 %v413_v33, %v409_v32  ;;  %v2941_v32 = vpack.c.bf16 %v343_v27, %v339_v26  ;;  %v338_v33 = vld [vmem:[#allocation2 + $0x10] sm:$0xff]  ;;  %v383_v61 = vld [vmem:[#allocation2 + $0x178] sm:$0xff]  ;;  %vm863_vm1 = vcmp.eq.s32.totalorder %v3881_v35, 0 }
  0xa8   :  { %2892 = vmatpush1.bf16.msra.mxu0 %v2891_v63  ;;  %v449_v63 = vld [vmem:[#allocation2 + $0x388] sm:$0xff]  ;;  %v410_v26 = vld [vmem:[#allocation2 + $0x250] sm:$0xff] }
  0xa9   :  { %2894 = vmatprep.subr.bf16.mxu0 %v2893_v2  ;;  %v2933_v1 = vpack.c.bf16 %v453_v0, %v449_v63  ;;  %v448_v2 = vld [vmem:[#allocation2 + $0x380] sm:$0xff]  ;;  %v2961_v63 = vpack.c.bf16 %v383_v61, %v379_v60  ;;  %v378_v0 = vld [vmem:[#allocation2 + $0x150] sm:$0xff] }
  0xaa   :  { %v2935_v4 = vpack.c.bf16 %v452_v3, %v448_v2  ;;  %v387_v2 = vld [vmem:[#allocation2 + $0x198] sm:$0xff]  ;;  %v414_v27 = vld [vmem:[#allocation2 + $0x270] sm:$0xff] }
  0xab   :  { %v391_v3 = vld [vmem:[#allocation2 + $0x1b8] sm:$0xff] }
  0xac   :  { %2896 = vmatpush1.bf16.msra.mxu0 %v2895_v5  ;;  %v457_v5 = vld [vmem:[#allocation2 + $0x3c8] sm:$0xff] }
  0xad   :  { %2898 = vmatprep.subr.bf16.mxu0 %v2897_v8  ;;  %v2937_v7 = vpack.c.bf16 %v461_v6, %v457_v5  ;;  %v456_v8 = vld [vmem:[#allocation2 + $0x3c0] sm:$0xff]  ;;  %v2965_v5 = vpack.c.bf16 %v391_v3, %v387_v2  ;;  %v386_v6 = vld [vmem:[#allocation2 + $0x190] sm:$0xff]  ;;  %v634_v2 = vld [vmem:[#allocation2 + $0x448] sm:$0xff] }
  0xae   :  { %v2939_v10 = vpack.c.bf16 %v460_v9, %v456_v8  ;;  %v395_v8 = vld [vmem:[#allocation2 + $0x1d8] sm:$0xff] }
  0xaf   :  { %v399_v9 = vld [vmem:[#allocation2 + $0x1f8] sm:$0xff] }
  0xb0   :  { %2900 = vmatpush1.bf16.msra.mxu0 %v2899_v11  ;;  %v231_v11 = vadd.s32 8, %v3881_v35  ;;  %v632_v3 = vld [vmem:[#allocation2 + $0x438] sm:$0xff] }
  0xb1   :  { %2902 = vmatprep.subr.bf16.mxu0 %v2901_v14 }
  0xb2   :  { %v233_v12 = vsub.s32 15, %v231_v11  ;;  %v2969_v11 = vpack.c.bf16 %v399_v9, %v395_v8  ;;  %v633_v8 = vld [vmem:[#allocation2 + $0x440] sm:$0xff]  ;;  %v631_v9 = vld [vmem:[#allocation2 + $0x430] sm:$0xff] }
  0xb4   :  { %2904 = vmatpush1.bf16.msra.mxu0 %v2903_v18  ;;  %v239_v13 = vmul.u32 8, %v233_v12  ;;  %v394_v12 = vld [vmem:[#allocation2 + $0x1d0] sm:$0xff] }
  0xb5   :  { %2906 = vmatprep.subr.bf16.mxu0 %v2905_v22 }
  0xb6   :  { %v243_v18 = vadd.s32 8, %v239_v13  ;;  %vm241_vm14 = vcmp.ge.s32.totalorder %v3855_v17, %v239_v13  ;;  %v398_v13 = vld [vmem:[#allocation2 + $0x1f0] sm:$0xff] }
  0xb8   :  { %2908 = vmatpush1.bf16.msra.mxu0 %v2907_v25  ;;  %vm245_vm15 = vcmp.lt.s32.totalorder %v3855_v17, %v243_v18  ;;  %v351_v17 = vld [vmem:[#allocation2 + $0x78] sm:$0xff] }
  0xb9   :  { %2910 = vmatprep.subr.bf16.mxu0 %v2909_v28  ;;  %vm247_vm0 = vmand %vm241_vm14, %vm245_vm15  ;;  %v2945_v39 = vpack.c.bf16 %v351_v17, %v347_v36  ;;  %v431_v36 = vld [vmem:[#allocation2 + $0x2f8] sm:$0xff] }
  0xba   :  { %v2620_v30 = vsel %vm247_vm0, 1.0, %v3775_v20 }
  0xbb   :  { %v253_v37 = vmul.f32 0.125, %v2620_v30  ;;  %v2979_v30 = vpack.c.bf16 %v414_v27, %v410_v26  ;;  %v646_v26 = vld [vmem:[#allocation2 + $0x4a8] sm:$0xff] }
  0xbc   :  { %2912 = vmatpush1.bf16.msra.mxu0 %v2911_v31 }
  0xbd   :  { %2914 = vmatprep.subr.bf16.mxu0 %v2913_v34  ;;  %v342_v34 = vld [vmem:[#allocation2 + $0x30] sm:$0xff] }
  0xc0   :  { %2916 = vmatpush1.bf16.msra.mxu0 %v2915_v38  ;;  %v2943_v38 = vpack.c.bf16 %v342_v34, %v338_v33  ;;  %v422_v33 = vld [vmem:[#allocation2 + $0x2b0] sm:$0xff]  ;;  %v427_v34 = vld [vmem:[#allocation2 + $0x2d8] sm:$0xff] }
  0xc1   :  { %2918 = vmatprep.subr.bf16.mxu0 %v2917_v41  ;;  %v350_v41 = vld [vmem:[#allocation2 + $0x70] sm:$0xff] }
  0xc4   :  { %2920 = vmatpush1.bf16.msra.mxu0 %v2919_v44  ;;  %v2947_v44 = vpack.c.bf16 %v350_v41, %v346_v40  ;;  %v435_v40 = vld [vmem:[#allocation2 + $0x318] sm:$0xff] }
  0xc5   :  { %2922 = vmatprep.subr.bf16.mxu0 %v2921_v47  ;;  %v358_v47 = vld [vmem:[#allocation2 + $0xb0] sm:$0xff]  ;;  %v439_v41 = vld [vmem:[#allocation2 + $0x338] sm:$0xff] }
  0xc6   :  { %v2989_v43 = vpack.c.bf16 %v439_v41, %v435_v40  ;;  %v658_v40 = vld [vmem:[#allocation2 + $0x508] sm:$0xff]  ;;  %v656_v41 = vld [vmem:[#allocation2 + $0x4f8] sm:$0xff] }
  0xc8   :  { %2924 = vmatpush1.bf16.msra.mxu0 %v2923_v50  ;;  %v2951_v50 = vpack.c.bf16 %v358_v47, %v354_v46  ;;  %v443_v46 = vld [vmem:[#allocation2 + $0x358] sm:$0xff] }
  0xc9   :  { %2926 = vmatprep.subr.bf16.mxu0 %v2925_v53  ;;  %v366_v53 = vld [vmem:[#allocation2 + $0xf0] sm:$0xff]  ;;  %v447_v47 = vld [vmem:[#allocation2 + $0x378] sm:$0xff] }
  0xca   :  { %v2993_v49 = vpack.c.bf16 %v447_v47, %v443_v46  ;;  %v657_v46 = vld [vmem:[#allocation2 + $0x500] sm:$0xff] }
  0xcc   :  { %2928 = vmatpush1.bf16.msra.mxu0 %v2927_v56  ;;  %v2955_v56 = vpack.c.bf16 %v366_v53, %v362_v52  ;;  %v451_v52 = vld [vmem:[#allocation2 + $0x398] sm:$0xff] }
  0xcd   :  { %2930 = vmatprep.subr.bf16.mxu0 %v2929_v59  ;;  %v374_v59 = vld [vmem:[#allocation2 + $0x130] sm:$0xff]  ;;  %v455_v53 = vld [vmem:[#allocation2 + $0x3b8] sm:$0xff] }
  0xce   :  { %v2997_v55 = vpack.c.bf16 %v455_v53, %v451_v52  ;;  %v666_v52 = vld [vmem:[#allocation2 + $0x548] sm:$0xff]  ;;  %v664_v53 = vld [vmem:[#allocation2 + $0x538] sm:$0xff] }
  0xd0   :  { %2932 = vmatpush1.bf16.msra.mxu0 %v2931_v62  ;;  %v2959_v62 = vpack.c.bf16 %v374_v59, %v370_v58  ;;  %v459_v58 = vld [vmem:[#allocation2 + $0x3d8] sm:$0xff] }
  0xd1   :  { %2934 = vmatprep.subr.bf16.mxu0 %v2933_v1  ;;  %v382_v1 = vld [vmem:[#allocation2 + $0x170] sm:$0xff]  ;;  %v463_v59 = vld [vmem:[#allocation2 + $0x3f8] sm:$0xff] }
  0xd2   :  { %v3001_v61 = vpack.c.bf16 %v463_v59, %v459_v58  ;;  %v665_v58 = vld [vmem:[#allocation2 + $0x540] sm:$0xff] }
  0xd4   :  { %2936 = vmatpush1.bf16.msra.mxu0 %v2935_v4  ;;  %v2963_v4 = vpack.c.bf16 %v382_v1, %v378_v0  ;;  %v630_v1 = vld [vmem:[#allocation2 + $0x428] sm:$0xff] }
  0xd5   :  { %2938 = vmatprep.subr.bf16.mxu0 %v2937_v7  ;;  %v390_v7 = vld [vmem:[#allocation2 + $0x1b0] sm:$0xff] }
  0xd8   :  { %2940 = vmatpush1.bf16.msra.mxu0 %v2939_v10  ;;  %v2967_v10 = vpack.c.bf16 %v390_v7, %v386_v6  ;;  %v629_v7 = vld [vmem:[#allocation2 + $0x420] sm:$0xff] }
 0x16e   :  { %v2732_v14 = vpop.f32.mrb[0].mxu0 }
 0x16f   :  { %v190_v15 = vpop.f32.mrb[1].mxu0 }
 0x170   :  { %v2861_v16 = vpack.c.bf16 %v2732_v14, %v190_v15  ;;  %v403_v14 = vld [vmem:[#allocation2 + $0x218] sm:$0xff] }
 0x171   :  { %v407_v15 = vld [vmem:[#allocation2 + $0x238] sm:$0xff] }
 0x172   :  { %v2735_v19 = vpop.f32.mrb[2].mxu0  ;;  %2862 = vmatprep.subr.bf16.mxu1 %v2861_v16  ;;  %v2973_v18 = vpack.c.bf16 %v407_v15, %v403_v14  ;;  %v644_v14 = vld [vmem:[#allocation2 + $0x498] sm:$0xff]  ;;  %v3899_v15 = vpack.c.bf16 %v633_v8, %v629_v7  ;;  %v669_v7 = vld [vmem:[#allocation2 + $0x560] sm:$0xff] }
 0x173   :  { %v200_v21 = vpop.f32.mrb[3].mxu0  ;;  %2864 = vmatpush3.bf16.msra.mxu1 %v2861_v16  ;;  %v2971_v16 = vpack.c.bf16 %v398_v13, %v394_v12  ;;  %v642_v12 = vld [vmem:[#allocation2 + $0x488] sm:$0xff]  ;;  %v640_v13 = vld [vmem:[#allocation2 + $0x478] sm:$0xff]  ;;  %v673_v8 = vld [vmem:[#allocation2 + $0x580] sm:$0xff] }
 0x174   :  { %v2865_v22 = vpack.c.bf16 %v2735_v19, %v200_v21  ;;  %v402_v19 = vld [vmem:[#allocation2 + $0x210] sm:$0xff] }
 0x175   :  { %v406_v21 = vld [vmem:[#allocation2 + $0x230] sm:$0xff] }
 0x176   :  { %v2738_v23 = vpop.f32.mrb[4].mxu0  ;;  %2866 = vmatprep.subr.bf16.mxu1 %v2865_v22 }
 0x177   :  { %v210_v24 = vpop.f32.mrb[5].mxu0  ;;  %2868 = vmatpush3.bf16.msra.mxu1 %v2865_v22  ;;  %v411_v22 = vld [vmem:[#allocation2 + $0x258] sm:$0xff] }
 0x178   :  { %v2869_v25 = vpack.c.bf16 %v2738_v23, %v210_v24  ;;  %v415_v23 = vld [vmem:[#allocation2 + $0x278] sm:$0xff]  ;;  %v2975_v24 = vpack.c.bf16 %v406_v21, %v402_v19  ;;  %v641_v19 = vld [vmem:[#allocation2 + $0x480] sm:$0xff] }
 0x17a   :  { %v2741_v28 = vpop.f32.mrb[6].mxu0  ;;  %2870 = vmatprep.subr.bf16.mxu1 %v2869_v25 }
 0x17b   :  { %v220_v29 = vpop.f32.mrb[7].mxu0  ;;  %2872 = vmatpush3.bf16.msra.mxu1 %v2869_v25  ;;  %v2977_v25 = vpack.c.bf16 %v415_v23, %v411_v22  ;;  %v3905_v23 = vpack.c.bf16 %v644_v14, %v640_v13  ;;  %v678_v13 = vld [vmem:[#allocation2 + $0x5a8] sm:$0xff] }
 0x17c   :  { %v2873_v31 = vpack.c.bf16 %v2741_v28, %v220_v29  ;;  %v419_v28 = vld [vmem:[#allocation2 + $0x298] sm:$0xff]  ;;  %v682_v14 = vld [vmem:[#allocation2 + $0x5c8] sm:$0xff] }
 0x17d   :  { %v423_v29 = vld [vmem:[#allocation2 + $0x2b8] sm:$0xff] }
 0x17e   :  { %2874 = vmatprep.subr.bf16.mxu1 %v2873_v31 }
 0x17f   :  { %2876 = vmatpush3.bf16.msra.mxu1 %v2873_v31  ;;  %v2981_v31 = vpack.c.bf16 %v423_v29, %v419_v28  ;;  %v650_v28 = vld [vmem:[#allocation2 + $0x4c8] sm:$0xff]  ;;  %v648_v29 = vld [vmem:[#allocation2 + $0x4b8] sm:$0xff] }
 0x180   :  { %2942 = vmatprep.subr.bf16.mxu1 %v2941_v32  ;;  %v418_v32 = vld [vmem:[#allocation2 + $0x290] sm:$0xff] }
 0x181   :  { %v2983_v17 = vpack.c.bf16 %v422_v33, %v418_v32  ;;  %v645_v33 = vld [vmem:[#allocation2 + $0x4a0] sm:$0xff] }
 0x182   :  { %2759 = vmatmul.mubr.msk.f32.vlgmr.msra.gmra.mrb[0].mxu1 %vm254_vm13, %v253_v37  ;;  %v2985_v37 = vpack.c.bf16 %v431_v36, %v427_v34  ;;  %v649_v34 = vld [vmem:[#allocation2 + $0x4c0] sm:$0xff]  ;;  %v3915_v36 = vpack.c.bf16 %v650_v28, %v646_v26 }
 0x183   :  { %2944 = vmatpush1.bf16.msra.mxu1 %v2943_v38  ;;  %v426_v38 = vld [vmem:[#allocation2 + $0x2d0] sm:$0xff]  ;;  %v681_v26 = vld [vmem:[#allocation2 + $0x5c0] sm:$0xff] }
 0x184   :  { %2946 = vmatprep.subr.bf16.mxu1 %v2945_v39  ;;  %v430_v39 = vld [vmem:[#allocation2 + $0x2f0] sm:$0xff] }
 0x185   :  { %v2987_v42 = vpack.c.bf16 %v430_v39, %v426_v38  ;;  %v651_v38 = vld [vmem:[#allocation2 + $0x4d0] sm:$0xff]  ;;  %v654_v39 = vld [vmem:[#allocation2 + $0x4e8] sm:$0xff] }
 0x186   :  { %v3929_v47 = vpack.c.bf16 %v658_v40, %v654_v39 }
 0x187   :  { %2948 = vmatpush1.bf16.msra.mxu1 %v2947_v44  ;;  %v434_v44 = vld [vmem:[#allocation2 + $0x310] sm:$0xff] }
 0x188   :  { %2950 = vmatprep.subr.bf16.mxu1 %v2949_v45  ;;  %v438_v45 = vld [vmem:[#allocation2 + $0x330] sm:$0xff] }
 0x189   :  { %v2991_v48 = vpack.c.bf16 %v438_v45, %v434_v44  ;;  %v653_v45 = vld [vmem:[#allocation2 + $0x4e0] sm:$0xff] }
 0x18b   :  { %2952 = vmatpush1.bf16.msra.mxu1 %v2951_v50  ;;  %v442_v50 = vld [vmem:[#allocation2 + $0x350] sm:$0xff] }
 0x18c   :  { %2954 = vmatprep.subr.bf16.mxu1 %v2953_v51  ;;  %v446_v51 = vld [vmem:[#allocation2 + $0x370] sm:$0xff] }
 0x18d   :  { %v2995_v54 = vpack.c.bf16 %v446_v51, %v442_v50  ;;  %v659_v50 = vld [vmem:[#allocation2 + $0x510] sm:$0xff]  ;;  %v662_v51 = vld [vmem:[#allocation2 + $0x528] sm:$0xff] }
 0x18e   :  { %v3941_v59 = vpack.c.bf16 %v666_v52, %v662_v51 }
 0x18f   :  { %2956 = vmatpush1.bf16.msra.mxu1 %v2955_v56  ;;  %v450_v56 = vld [vmem:[#allocation2 + $0x390] sm:$0xff] }
 0x190   :  { %2958 = vmatprep.subr.bf16.mxu1 %v2957_v57  ;;  %v454_v57 = vld [vmem:[#allocation2 + $0x3b0] sm:$0xff] }
 0x191   :  { %v2999_v60 = vpack.c.bf16 %v454_v57, %v450_v56  ;;  %v661_v57 = vld [vmem:[#allocation2 + $0x520] sm:$0xff] }
 0x193   :  { %2960 = vmatpush1.bf16.msra.mxu1 %v2959_v62  ;;  %v458_v62 = vld [vmem:[#allocation2 + $0x3d0] sm:$0xff] }
 0x194   :  { %2962 = vmatprep.subr.bf16.mxu1 %v2961_v63  ;;  %v462_v63 = vld [vmem:[#allocation2 + $0x3f0] sm:$0xff] }
 0x195   :  { %v3003_v0 = vpack.c.bf16 %v462_v63, %v458_v62  ;;  %v667_v62 = vld [vmem:[#allocation2 + $0x550] sm:$0xff]  ;;  %v670_v63 = vld [vmem:[#allocation2 + $0x568] sm:$0xff] }
 0x197   :  { %2964 = vmatpush1.bf16.msra.mxu1 %v2963_v4  ;;  %v3893_v4 = vpack.c.bf16 %v634_v2, %v630_v1  ;;  %v672_v1 = vld [vmem:[#allocation2 + $0x578] sm:$0xff] }
 0x198   :  { %2966 = vmatprep.subr.bf16.mxu1 %v2965_v5  ;;  %v636_v5 = vld [vmem:[#allocation2 + $0x458] sm:$0xff] }
 0x199   :  { %v3895_v6 = vpack.c.bf16 %v636_v5, %v632_v3  ;;  %3006 = vmatprep.subr.bf16.mxu0 %v3893_v4  ;;  %v676_v2 = vld [vmem:[#allocation2 + $0x598] sm:$0xff]  ;;  %v3947_v3 = vpack.c.bf16 %v665_v58, %v661_v57 }
 0x19b   :  { %2968 = vmatpush1.bf16.msra.mxu1 %v2967_v10  ;;  %v635_v10 = vld [vmem:[#allocation2 + $0x450] sm:$0xff] }
 0x19c   :  { %2970 = vmatprep.subr.bf16.mxu1 %v2969_v11  ;;  %v638_v11 = vld [vmem:[#allocation2 + $0x468] sm:$0xff] }
 0x19d   :  { %v3903_v22 = vpack.c.bf16 %v642_v12, %v638_v11  ;;  %v671_v11 = vld [vmem:[#allocation2 + $0x570] sm:$0xff] }
 0x19e   :  { %v675_v12 = vld [vmem:[#allocation2 + $0x590] sm:$0xff] }
 0x19f   :  { %2972 = vmatpush1.bf16.msra.mxu1 %v2971_v16  ;;  %v3901_v16 = vpack.c.bf16 %v635_v10, %v631_v9  ;;  %v3955_v10 = vpack.c.bf16 %v676_v2, %v672_v1 }
 0x1a0   :  { %2974 = vmatprep.subr.bf16.mxu1 %v2973_v18  ;;  %v637_v18 = vld [vmem:[#allocation2 + $0x460] sm:$0xff] }
 0x1a3   :  { %2976 = vmatpush1.bf16.msra.mxu1 %v2975_v24  ;;  %v639_v24 = vld [vmem:[#allocation2 + $0x470] sm:$0xff] }
 0x1a4   :  { %2978 = vmatprep.subr.bf16.mxu1 %v2977_v25  ;;  %v643_v25 = vld [vmem:[#allocation2 + $0x490] sm:$0xff] }
 0x1a5   :  { %v3911_v32 = vpack.c.bf16 %v643_v25, %v639_v24  ;;  %v3961_v24 = vpack.c.bf16 %v675_v12, %v671_v11  ;;  %v677_v25 = vld [vmem:[#allocation2 + $0x5a0] sm:$0xff] }
 0x1a6   :  { %v3971_v39 = vpack.c.bf16 %v681_v26, %v677_v25 }
 0x1a7   :  { %2980 = vmatpush1.bf16.msra.mxu1 %v2979_v30  ;;  %v652_v30 = vld [vmem:[#allocation2 + $0x4d8] sm:$0xff] }
 0x1a8   :  { %2982 = vmatprep.subr.bf16.mxu1 %v2981_v31  ;;  %v3909_v31 = vpack.c.bf16 %v641_v19, %v637_v18  ;;  %v680_v18 = vld [vmem:[#allocation2 + $0x5b8] sm:$0xff] }
 0x1a9   :  { %v684_v19 = vld [vmem:[#allocation2 + $0x5d8] sm:$0xff] }
 0x1aa   :  { %v3967_v28 = vpack.c.bf16 %v684_v19, %v680_v18  ;;  %v481_v19 = vsub.s32 3, %v3881_v35 }
 0x1ab   :  { %2984 = vmatpush1.bf16.msra.mxu1 %v2983_v17  ;;  %v3917_v17 = vpack.c.bf16 %v652_v30, %v648_v29  ;;  %v679_v29 = vld [vmem:[#allocation2 + $0x5b0] sm:$0xff] }
 0x1ac   :  { %2986 = vmatprep.subr.bf16.mxu1 %v2985_v37  ;;  %v647_v37 = vld [vmem:[#allocation2 + $0x4b0] sm:$0xff] }
 0x1ad   :  { %v3925_v44 = vpack.c.bf16 %v651_v38, %v647_v37  ;;  %v683_v30 = vld [vmem:[#allocation2 + $0x5d0] sm:$0xff]  ;;  %v688_v37 = vld [vmem:[#allocation2 + $0x5f8] sm:$0xff] }
 0x1ae   :  { %v692_v38 = vld [vmem:[#allocation2 + $0x618] sm:$0xff]  ;;  %v3973_v40 = vpack.c.bf16 %v683_v30, %v679_v29 }
 0x1af   :  { %2988 = vmatpush1.bf16.msra.mxu1 %v2987_v42  ;;  %v660_v42 = vld [vmem:[#allocation2 + $0x518] sm:$0xff] }
 0x1b0   :  { %2990 = vmatprep.subr.bf16.mxu1 %v2989_v43  ;;  %v3923_v43 = vpack.c.bf16 %v649_v34, %v645_v33  ;;  %v686_v33 = vld [vmem:[#allocation2 + $0x5e8] sm:$0xff] }
 0x1b1   :  { %v690_v34 = vld [vmem:[#allocation2 + $0x608] sm:$0xff] }
 0x1b3   :  { %2992 = vmatpush1.bf16.msra.mxu1 %v2991_v48  ;;  %v3931_v48 = vpack.c.bf16 %v660_v42, %v656_v41  ;;  %v685_v41 = vld [vmem:[#allocation2 + $0x5e0] sm:$0xff]  ;;  %v3977_v42 = vpack.c.bf16 %v690_v34, %v686_v33 }
 0x1b4   :  { %2994 = vmatprep.subr.bf16.mxu1 %v2993_v49  ;;  %v655_v49 = vld [vmem:[#allocation2 + $0x4f0] sm:$0xff] }
 0x1b5   :  { %v3937_v56 = vpack.c.bf16 %v659_v50, %v655_v49  ;;  %v687_v49 = vld [vmem:[#allocation2 + $0x5f0] sm:$0xff] }
 0x1b6   :  { %v691_v50 = vld [vmem:[#allocation2 + $0x610] sm:$0xff] }
 0x1b7   :  { %2996 = vmatpush1.bf16.msra.mxu1 %v2995_v54  ;;  %v668_v54 = vld [vmem:[#allocation2 + $0x558] sm:$0xff]  ;;  %v3985_v52 = vpack.c.bf16 %v691_v50, %v687_v49 }
 0x1b8   :  { %2998 = vmatprep.subr.bf16.mxu1 %v2997_v55  ;;  %v3935_v55 = vpack.c.bf16 %v657_v46, %v653_v45  ;;  %v3979_v45 = vpack.c.bf16 %v692_v38, %v688_v37  ;;  %v689_v46 = vld [vmem:[#allocation2 + $0x600] sm:$0xff] }
 0x1b9   :  { %v3983_v51 = vpack.c.bf16 %v689_v46, %v685_v41 }
 0x1bb   :  { %3000 = vmatpush1.bf16.msra.mxu1 %v2999_v60  ;;  %v3943_v60 = vpack.c.bf16 %v668_v54, %v664_v53 }
 0x1bc   :  { %3002 = vmatprep.subr.bf16.mxu1 %v3001_v61  ;;  %v663_v61 = vld [vmem:[#allocation2 + $0x530] sm:$0xff] }
 0x1bd   :  { %v3949_v5 = vpack.c.bf16 %v667_v62, %v663_v61  ;;  %v469_v61 = vsub.s32 0, %v3881_v35  ;;  %v465_v62 = vld [vmem:[#allocation2 + $0x400] ss:$8 sm:$0xf] }
 0x1be   :  { %v482_v33 = vrot.slane %v465_v62, %v481_v19 }
 0x1bf   :  { %3004 = vmatpush1.bf16.msra.mxu1 %v3003_v0  ;;  %v674_v0 = vld [vmem:[#allocation2 + $0x588] sm:$0xff] }
 0x1c0   :  { %3038 = vmatprep.subr.bf16.mxu1 %v3895_v6  ;;  %v3953_v9 = vpack.c.bf16 %v674_v0, %v670_v63  ;;  %v473_v63 = vsub.s32 1, %v3881_v35  ;;  %v470_v0 = vrot.slane %v465_v62, %v469_v61 }
 0x1c2   :  { %v474_v1 = vrot.slane %v465_v62, %v473_v63 }
 0x255   :  { %v2760_v21 = vpop.f32.mrb[0].mxu1 }
 0x256   :  { %v327_v27 = vpop.f32.mrb[1].mxu1  ;;  %551 = vmatprep.mubr.f32.mxu0 %v2760_v21  ;;  %622 = vmatprep.mubr.f32.mxu1 %v2760_v21  ;;  %v3959_v21 = vpack.c.bf16 %v673_v8, %v669_v7  ;;  %v477_v7 = vsub.s32 2, %v3881_v35 }
 0x257   :  { %552 = vmatmul.mubr.f32.vlgmr.msra.gmra.mrb[8].mxu0 %v327_v27  ;;  %623 = vmatmul.mubr.f32.vlgmr.msra.gmra.mrb[2].mxu1 %v327_v27  ;;  %v3965_v27 = vpack.c.bf16 %v682_v14, %v678_v13 }
 0x258   :  { %3008 = vmatpush1.bf16.msra.mxu0 %v3899_v15  ;;  %3040 = vmatpush1.bf16.msra.mxu1 %v3901_v16  ;;  %v478_v26 = vrot.slane %v465_v62, %v477_v7 }
 0x259   :  { %3010 = vmatprep.subr.bf16.mxu0 %v3903_v22  ;;  %3042 = vmatprep.subr.bf16.mxu1 %v3905_v23 }
 0x25a   :  { %757 = vmatprep.mubr.f32.mxu0 %v3775_v20  ;;  %828 = vmatprep.mubr.f32.mxu1 %v3775_v20 }
 0x25c   :  { %3012 = vmatpush1.bf16.msra.mxu0 %v3909_v31  ;;  %3044 = vmatpush1.bf16.msra.mxu1 %v3911_v32 }
 0x25d   :  { %3014 = vmatprep.subr.bf16.mxu0 %v3915_v36  ;;  %3046 = vmatprep.subr.bf16.mxu1 %v3917_v17 }
 0x260   :  { %3016 = vmatpush1.bf16.msra.mxu0 %v3923_v43  ;;  %3048 = vmatpush1.bf16.msra.mxu1 %v3925_v44 }
 0x261   :  { %3018 = vmatprep.subr.bf16.mxu0 %v3929_v47  ;;  %3050 = vmatprep.subr.bf16.mxu1 %v3931_v48 }
 0x264   :  { %3020 = vmatpush1.bf16.msra.mxu0 %v3935_v55  ;;  %3052 = vmatpush1.bf16.msra.mxu1 %v3937_v56 }
 0x265   :  { %3022 = vmatprep.subr.bf16.mxu0 %v3941_v59  ;;  %3054 = vmatprep.subr.bf16.mxu1 %v3943_v60 }
 0x268   :  { %3024 = vmatpush1.bf16.msra.mxu0 %v3947_v3  ;;  %3056 = vmatpush1.bf16.msra.mxu1 %v3949_v5 }
 0x269   :  { %3026 = vmatprep.subr.bf16.mxu0 %v3953_v9  ;;  %3058 = vmatprep.subr.bf16.mxu1 %v3955_v10 }
 0x26c   :  { %3028 = vmatpush1.bf16.msra.mxu0 %v3959_v21  ;;  %3060 = vmatpush1.bf16.msra.mxu1 %v3961_v24 }
 0x26d   :  { %3030 = vmatprep.subr.bf16.mxu0 %v3965_v27  ;;  %3062 = vmatprep.subr.bf16.mxu1 %v3967_v28 }
 0x270   :  { %3032 = vmatpush1.bf16.msra.mxu0 %v3971_v39  ;;  %3064 = vmatpush1.bf16.msra.mxu1 %v3973_v40 }
 0x271   :  { %3034 = vmatprep.subr.bf16.mxu0 %v3977_v42  ;;  %3066 = vmatprep.subr.bf16.mxu1 %v3979_v45 }
 0x274   :  { %3036 = vmatpush1.bf16.msra.mxu0 %v3983_v51  ;;  %3068 = vmatpush1.bf16.msra.mxu1 %v3985_v52 }
 0x275   :  { %3070 = vmatprep.subr.bf16.mxu0 %v3893_v4  ;;  %3102 = vmatprep.subr.bf16.mxu1 %v3895_v6 }
 0x277   :  { %758 = vmatmul.mubr.f32.vlgmr.msra.gmra.mrb[10].mxu0 %v3775_v20  ;;  %829 = vmatmul.mubr.f32.vlgmr.msra.gmra.mrb[4].mxu1 %v3775_v20 }
 0x278   :  { %3072 = vmatpush1.bf16.msra.mxu0 %v3899_v15  ;;  %3104 = vmatpush1.bf16.msra.mxu1 %v3901_v16 }
 0x279   :  { %3074 = vmatprep.subr.bf16.mxu0 %v3903_v22  ;;  %3106 = vmatprep.subr.bf16.mxu1 %v3905_v23 }
 0x27a   :  { %935 = vmatprep.mubr.f32.mxu0 %v3775_v20  ;;  %1006 = vmatprep.mubr.f32.mxu1 %v3775_v20 }
 0x27c   :  { %3076 = vmatpush1.bf16.msra.mxu0 %v3909_v31  ;;  %3108 = vmatpush1.bf16.msra.mxu1 %v3911_v32 }
 0x27d   :  { %3078 = vmatprep.subr.bf16.mxu0 %v3915_v36  ;;  %3110 = vmatprep.subr.bf16.mxu1 %v3917_v17 }
 0x280   :  { %3080 = vmatpush1.bf16.msra.mxu0 %v3923_v43  ;;  %3112 = vmatpush1.bf16.msra.mxu1 %v3925_v44 }
 0x281   :  { %3082 = vmatprep.subr.bf16.mxu0 %v3929_v47  ;;  %3114 = vmatprep.subr.bf16.mxu1 %v3931_v48 }
 0x284   :  { %3084 = vmatpush1.bf16.msra.mxu0 %v3935_v55  ;;  %3116 = vmatpush1.bf16.msra.mxu1 %v3937_v56 }
 0x285   :  { %3086 = vmatprep.subr.bf16.mxu0 %v3941_v59  ;;  %3118 = vmatprep.subr.bf16.mxu1 %v3943_v60 }
 0x288   :  { %3088 = vmatpush1.bf16.msra.mxu0 %v3947_v3  ;;  %3120 = vmatpush1.bf16.msra.mxu1 %v3949_v5 }
 0x289   :  { %3090 = vmatprep.subr.bf16.mxu0 %v3953_v9  ;;  %3122 = vmatprep.subr.bf16.mxu1 %v3955_v10 }
 0x28c   :  { %3092 = vmatpush1.bf16.msra.mxu0 %v3959_v21  ;;  %3124 = vmatpush1.bf16.msra.mxu1 %v3961_v24 }
 0x28d   :  { %3094 = vmatprep.subr.bf16.mxu0 %v3965_v27  ;;  %3126 = vmatprep.subr.bf16.mxu1 %v3967_v28 }
 0x290   :  { %3096 = vmatpush1.bf16.msra.mxu0 %v3971_v39  ;;  %3128 = vmatpush1.bf16.msra.mxu1 %v3973_v40 }
 0x291   :  { %3098 = vmatprep.subr.bf16.mxu0 %v3977_v42  ;;  %3130 = vmatprep.subr.bf16.mxu1 %v3979_v45 }
 0x294   :  { %3100 = vmatpush1.bf16.msra.mxu0 %v3983_v51  ;;  %3132 = vmatpush1.bf16.msra.mxu1 %v3985_v52 }
 0x295   :  { %3134 = vmatprep.subr.bf16.mxu0 %v3893_v4  ;;  %3166 = vmatprep.subr.bf16.mxu1 %v3895_v6 }
 0x32a   :  { %v553_v53 = vpop.f32.mrb[8].mxu0  ;;  %v624_v54 = vpop.f32.mrb[2].mxu1 }
 0x32b   :  { %v555_v57 = vpop.f32.mrb[9].mxu0  ;;  %v626_v58 = vpop.f32.mrb[3].mxu1  ;;  %v4035_v2 = vadd.f32 %v553_v53, %v470_v0  ;;  %v4047_v34 = vadd.f32 %v624_v54, %v478_v26 }
 0x32c   :  { %v4038_v8 = vadd.f32 %v555_v57, %v474_v1  ;;  %v4050_v38 = vadd.f32 %v626_v58, %v482_v33 }
 0x34a   :  { %v759_v11 = vpop.f32.mrb[10].mxu0  ;;  %v830_v12 = vpop.f32.mrb[4].mxu1 }
 0x34b   :  { %v835_v13 = vadd.f32 %v759_v11, %v4035_v2  ;;  %v761_v14 = vpop.f32.mrb[11].mxu0  ;;  %v832_v18 = vpop.f32.mrb[5].mxu1  ;;  %v837_v37 = vadd.f32 %v830_v12, %v4047_v34 }
 0x34c   :  { %v836_v25 = vadd.f32 %v761_v14, %v4038_v8  ;;  %v838_v41 = vadd.f32 %v832_v18, %v4050_v38 }
 0x34d   :  { %v2623_v29 = vmul.f32 -1.442695, %v835_v13  ;;  %v2625_v46 = vmul.f32 -1.442695, %v837_v37 }
 0x34e   :  { %v2624_v30 = vmul.f32 -1.442695, %v836_v25 }
 0x34f   :  { %3587 = vpow2.f32 %v2623_v29 }
 0x350   :  { %3589 = vpow2.f32 %v2624_v30 }
 0x351   :  { %3591 = vtanh.f32 %v838_v41 }
 0x352   :  { %3593 = vpow2.f32 %v2625_v46 }
 0x359   :  { %v3588_v49 = vpop.eup %3587 }
 0x35a   :  { %v848_v50 = vadd.f32 1.0, %v3588_v49  ;;  %v3590_v53 = vpop.eup %3589 }
 0x35b   :  { %v849_v57 = vadd.f32 1.0, %v3590_v53  ;;  %v3592_v0 = vpop.eup %3591 }
 0x35c   :  { %3595 = vrcp.f32 %v848_v50  ;;  %v3594_v62 = vpop.eup %3593 }
 0x35d   :  { %3597 = vrcp.f32 %v849_v57  ;;  %v850_v13 = vadd.f32 1.0, %v3594_v62 }
 0x35f   :  { %3599 = vrcp.f32 %v850_v13 }
 0x366   :  { %v3596_v54 = vpop.eup %3595 }
 0x367   :  { %v859_v1 = vmul.f32 %v3596_v54, %v3592_v0  ;;  %v3598_v11 = vpop.eup %3597 }
 0x368   :  { %v858_v12 = vmul.f32 0.0, %v3598_v11 }
 0x369   :  { %v3600_v14 = vpop.eup %3599 }
 0x36a   :  { %v4053_v58 = vadd.f32 %v859_v1, %v858_v12 }
 0x36c   :  { %3601 = vtanh.f32 %v4053_v58 }
 0x376   :  { %v3602_v18 = vpop.eup %3601 }
 0x377   :  { %v4056_v25 = vmul.f32 %v3602_v18, %v3600_v14 }
 0x379   :  { %936 = vmatmul.mubr.f32.vlgmr.msra.gmra.mrb[12].mxu0 %v4056_v25  ;;  %1007 = vmatmul.mubr.f32.vlgmr.msra.gmra.mrb[6].mxu1 %v4056_v25 }
 0x37a   :  { %3136 = vmatpush1.bf16.msra.mxu0 %v3899_v15  ;;  %3168 = vmatpush1.bf16.msra.mxu1 %v3901_v16 }
 0x37b   :  { %3138 = vmatprep.subr.bf16.mxu0 %v3903_v22  ;;  %3170 = vmatprep.subr.bf16.mxu1 %v3905_v23 }
 0x37c   :  { %1131 = vmatprep.mubr.f32.mxu0 %v3775_v20  ;;  %1202 = vmatprep.mubr.f32.mxu1 %v3775_v20 }
 0x37e   :  { %3140 = vmatpush1.bf16.msra.mxu0 %v3909_v31  ;;  %3172 = vmatpush1.bf16.msra.mxu1 %v3911_v32 }
 0x37f   :  { %3142 = vmatprep.subr.bf16.mxu0 %v3915_v36  ;;  %3174 = vmatprep.subr.bf16.mxu1 %v3917_v17 }
 0x382   :  { %3144 = vmatpush1.bf16.msra.mxu0 %v3923_v43  ;;  %3176 = vmatpush1.bf16.msra.mxu1 %v3925_v44 }
 0x383   :  { %3146 = vmatprep.subr.bf16.mxu0 %v3929_v47  ;;  %3178 = vmatprep.subr.bf16.mxu1 %v3931_v48 }
 0x386   :  { %3148 = vmatpush1.bf16.msra.mxu0 %v3935_v55  ;;  %3180 = vmatpush1.bf16.msra.mxu1 %v3937_v56 }
 0x387   :  { %3150 = vmatprep.subr.bf16.mxu0 %v3941_v59  ;;  %3182 = vmatprep.subr.bf16.mxu1 %v3943_v60 }
 0x38a   :  { %3152 = vmatpush1.bf16.msra.mxu0 %v3947_v3  ;;  %3184 = vmatpush1.bf16.msra.mxu1 %v3949_v5 }
 0x38b   :  { %3154 = vmatprep.subr.bf16.mxu0 %v3953_v9  ;;  %3186 = vmatprep.subr.bf16.mxu1 %v3955_v10 }
 0x38e   :  { %3156 = vmatpush1.bf16.msra.mxu0 %v3959_v21  ;;  %3188 = vmatpush1.bf16.msra.mxu1 %v3961_v24 }
 0x38f   :  { %3158 = vmatprep.subr.bf16.mxu0 %v3965_v27  ;;  %3190 = vmatprep.subr.bf16.mxu1 %v3967_v28 }
 0x392   :  { %3160 = vmatpush1.bf16.msra.mxu0 %v3971_v39  ;;  %3192 = vmatpush1.bf16.msra.mxu1 %v3973_v40 }
 0x393   :  { %3162 = vmatprep.subr.bf16.mxu0 %v3977_v42  ;;  %3194 = vmatprep.subr.bf16.mxu1 %v3979_v45 }
 0x396   :  { %3164 = vmatpush1.bf16.msra.mxu0 %v3983_v51  ;;  %3196 = vmatpush1.bf16.msra.mxu1 %v3985_v52 }
 0x397   :  { %3198 = vmatprep.subr.bf16.mxu0 %v3893_v4  ;;  %3230 = vmatprep.subr.bf16.mxu1 %v3895_v6 }
 0x44c   :  { %v937_v26 = vpop.f32.mrb[12].mxu0  ;;  %v1008_v29 = vpop.f32.mrb[6].mxu1 }
 0x44d   :  { %v1017_v30 = vrot.slane %v937_v26, 7  ;;  %v939_v33 = vpop.f32.mrb[13].mxu0  ;;  %v1010_v37 = vpop.f32.mrb[7].mxu1  ;;  %v1019_v57 = vrot.slane %v1008_v29, 7  ;;  %v1049_v29 = vrot.slane %v4053_v58, 7 }
 0x44e   :  { %v1018_v41 = vrot.slane %v939_v33, 7  ;;  %v1020_v0 = vrot.slane %v1010_v37, 7 }
 0x44f   :  { %v1025_v46 = vadd.f32 %v1017_v30, %v4035_v2  ;;  %v1027_v62 = vadd.f32 %v1019_v57, %v4047_v34  ;;  %v867_v57 = vrot.slane %v4056_v25, %v469_v61 }
 0x450   :  { %v1026_v49 = vadd.f32 %v1018_v41, %v4038_v8  ;;  %v1028_v54 = vadd.f32 %v1020_v0, %v4050_v38 }
 0x451   :  { %v2626_v50 = vmul.f32 -1.442695, %v1025_v46  ;;  %v2628_v1 = vmul.f32 -1.442695, %v1027_v62 }
 0x452   :  { %v2627_v53 = vmul.f32 -1.442695, %v1026_v49 }
 0x453   :  { %3603 = vpow2.f32 %v2626_v50 }
 0x454   :  { %3605 = vpow2.f32 %v2627_v53 }
 0x455   :  { %3607 = vtanh.f32 %v1028_v54  ;;  %v868_v54 = vsel %vm863_vm1, %v867_v57, 0.0 }
 0x456   :  { %3609 = vpow2.f32 %v2628_v1  ;;  %v870_v1 = vsel %vm869_vm2, %v867_v57, 0.0 }
 0x45d   :  { %v3604_v11 = vpop.eup %3603 }
 0x45e   :  { %v1038_v13 = vadd.f32 1.0, %v3604_v11  ;;  %v3606_v12 = vpop.eup %3605 }
 0x45f   :  { %v1039_v14 = vadd.f32 1.0, %v3606_v12  ;;  %v3608_v18 = vpop.eup %3607 }
 0x460   :  { %3611 = vrcp.f32 %v1038_v13  ;;  %v3610_v26 = vpop.eup %3609 }
 0x461   :  { %3613 = vrcp.f32 %v1039_v14  ;;  %v1040_v41 = vadd.f32 1.0, %v3610_v26 }
 0x463   :  { %3615 = vrcp.f32 %v1040_v41 }
 0x46a   :  { %v3612_v30 = vpop.eup %3611 }
 0x46b   :  { %v1052_v33 = vmul.f32 %v3612_v30, %v3608_v18  ;;  %v3614_v37 = vpop.eup %3613 }
 0x46c   :  { %v1051_v46 = vmul.f32 %v3614_v37, %v1049_v29 }
 0x46d   :  { %v3616_v50 = vpop.eup %3615 }
 0x46e   :  { %v4099_v49 = vadd.f32 %v1052_v33, %v1051_v46 }
 0x470   :  { %3617 = vtanh.f32 %v4099_v49 }
 0x47a   :  { %v3618_v53 = vpop.eup %3617 }
 0x47b   :  { %v1055_v58 = vmul.f32 %v3618_v53, %v3616_v50 }
 0x47d   :  { %v1060_v0 = vrot.slane %v1055_v58, %v473_v63  ;;  %v1065_v62 = vrot.slane %v1055_v58, 1 }
 0x47f   :  { %v4117_v61 = vsel %vm1056_vm3, %v1060_v0, %v868_v54  ;;  %v4121_v25 = vsel %vm1062_vm4, %v1060_v0, %v870_v1  ;;  %1132 = vmatmul.mubr.f32.vlgmr.msra.gmra.mrb[14].mxu0 %v1065_v62  ;;  %1203 = vmatmul.mubr.f32.vlgmr.msra.gmra.mrb[8].mxu1 %v1065_v62 }
 0x480   :  { %3200 = vmatpush1.bf16.msra.mxu0 %v3899_v15  ;;  %3232 = vmatpush1.bf16.msra.mxu1 %v3901_v16 }
 0x481   :  { %3202 = vmatprep.subr.bf16.mxu0 %v3903_v22  ;;  %3234 = vmatprep.subr.bf16.mxu1 %v3905_v23 }
 0x482   :  { %1327 = vmatprep.mubr.f32.mxu0 %v3775_v20  ;;  %1398 = vmatprep.mubr.f32.mxu1 %v3775_v20 }
 0x484   :  { %3204 = vmatpush1.bf16.msra.mxu0 %v3909_v31  ;;  %3236 = vmatpush1.bf16.msra.mxu1 %v3911_v32 }
 0x485   :  { %3206 = vmatprep.subr.bf16.mxu0 %v3915_v36  ;;  %3238 = vmatprep.subr.bf16.mxu1 %v3917_v17 }
 0x488   :  { %3208 = vmatpush1.bf16.msra.mxu0 %v3923_v43  ;;  %3240 = vmatpush1.bf16.msra.mxu1 %v3925_v44 }
 0x489   :  { %3210 = vmatprep.subr.bf16.mxu0 %v3929_v47  ;;  %3242 = vmatprep.subr.bf16.mxu1 %v3931_v48 }
 0x48c   :  { %3212 = vmatpush1.bf16.msra.mxu0 %v3935_v55  ;;  %3244 = vmatpush1.bf16.msra.mxu1 %v3937_v56 }
 0x48d   :  { %3214 = vmatprep.subr.bf16.mxu0 %v3941_v59  ;;  %3246 = vmatprep.subr.bf16.mxu1 %v3943_v60 }
 0x490   :  { %3216 = vmatpush1.bf16.msra.mxu0 %v3947_v3  ;;  %3248 = vmatpush1.bf16.msra.mxu1 %v3949_v5 }
 0x491   :  { %3218 = vmatprep.subr.bf16.mxu0 %v3953_v9  ;;  %3250 = vmatprep.subr.bf16.mxu1 %v3955_v10 }
 0x494   :  { %3220 = vmatpush1.bf16.msra.mxu0 %v3959_v21  ;;  %3252 = vmatpush1.bf16.msra.mxu1 %v3961_v24 }
 0x495   :  { %3222 = vmatprep.subr.bf16.mxu0 %v3965_v27  ;;  %3254 = vmatprep.subr.bf16.mxu1 %v3967_v28 }
 0x498   :  { %3224 = vmatpush1.bf16.msra.mxu0 %v3971_v39  ;;  %3256 = vmatpush1.bf16.msra.mxu1 %v3973_v40 }
 0x499   :  { %3226 = vmatprep.subr.bf16.mxu0 %v3977_v42  ;;  %3258 = vmatprep.subr.bf16.mxu1 %v3979_v45 }
 0x49c   :  { %3228 = vmatpush1.bf16.msra.mxu0 %v3983_v51  ;;  %3260 = vmatpush1.bf16.msra.mxu1 %v3985_v52 }
 0x49d   :  { %3262 = vmatprep.subr.bf16.mxu0 %v3893_v4  ;;  %3294 = vmatprep.subr.bf16.mxu1 %v3895_v6 }
 0x552   :  { %v1133_v63 = vpop.f32.mrb[14].mxu0  ;;  %v1204_v11 = vpop.f32.mrb[8].mxu1 }
 0x553   :  { %v1213_v13 = vrot.slane %v1133_v63, 6  ;;  %v1135_v12 = vpop.f32.mrb[15].mxu0  ;;  %v1206_v14 = vpop.f32.mrb[9].mxu1  ;;  %v1215_v37 = vrot.slane %v1204_v11, 6  ;;  %v1245_v11 = vrot.slane %v4099_v49, 7 }
 0x554   :  { %v1214_v18 = vrot.slane %v1135_v12, 6  ;;  %v1216_v41 = vrot.slane %v1206_v14, 6 }
 0x555   :  { %v1221_v26 = vadd.f32 %v1213_v13, %v4035_v2  ;;  %v1223_v46 = vadd.f32 %v1215_v37, %v4047_v34 }
 0x556   :  { %v1222_v30 = vadd.f32 %v1214_v18, %v4038_v8  ;;  %v1224_v50 = vadd.f32 %v1216_v41, %v4050_v38 }
 0x557   :  { %v2629_v29 = vmul.f32 -1.442695, %v1221_v26  ;;  %v2631_v53 = vmul.f32 -1.442695, %v1223_v46 }
 0x558   :  { %v2630_v33 = vmul.f32 -1.442695, %v1222_v30 }
 0x559   :  { %3619 = vpow2.f32 %v2629_v29 }
 0x55a   :  { %3621 = vpow2.f32 %v2630_v33 }
 0x55b   :  { %3623 = vtanh.f32 %v1224_v50 }
 0x55c   :  { %3625 = vpow2.f32 %v2631_v53 }
 0x563   :  { %v3620_v57 = vpop.eup %3619 }
 0x564   :  { %v1234_v58 = vadd.f32 1.0, %v3620_v57  ;;  %v3622_v0 = vpop.eup %3621 }
 0x565   :  { %v1235_v62 = vadd.f32 1.0, %v3622_v0  ;;  %v3624_v54 = vpop.eup %3623 }
 0x566   :  { %3627 = vrcp.f32 %v1234_v58  ;;  %v3626_v1 = vpop.eup %3625 }
 0x567   :  { %3629 = vrcp.f32 %v1235_v62  ;;  %v1236_v14 = vadd.f32 1.0, %v3626_v1 }
 0x569   :  { %3631 = vrcp.f32 %v1236_v14 }
 0x570   :  { %v3628_v63 = vpop.eup %3627 }
 0x571   :  { %v1248_v13 = vmul.f32 %v3628_v63, %v3624_v54  ;;  %v3630_v12 = vpop.eup %3629 }
 0x572   :  { %v1247_v18 = vmul.f32 %v3630_v12, %v1245_v11 }
 0x573   :  { %v3632_v30 = vpop.eup %3631 }
 0x574   :  { %v4162_v26 = vadd.f32 %v1248_v13, %v1247_v18 }
 0x576   :  { %3633 = vtanh.f32 %v4162_v26 }
 0x580   :  { %v3634_v29 = vpop.eup %3633 }
 0x581   :  { %v1251_v33 = vmul.f32 %v3634_v29, %v3632_v30 }
 0x583   :  { %v1256_v37 = vrot.slane %v1251_v33, %v477_v7  ;;  %v1261_v49 = vrot.slane %v1251_v33, 2 }
 0x585   :  { %v4172_v41 = vsel %vm1252_vm5, %v1256_v37, %v4117_v61  ;;  %v4177_v46 = vsel %vm1258_vm6, %v1256_v37, %v4121_v25  ;;  %1328 = vmatmul.mubr.f32.vlgmr.msra.gmra.mrb[16].mxu0 %v1261_v49  ;;  %1399 = vmatmul.mubr.f32.vlgmr.msra.gmra.mrb[10].mxu1 %v1261_v49 }
 0x586   :  { %3264 = vmatpush1.bf16.msra.mxu0 %v3899_v15  ;;  %3296 = vmatpush1.bf16.msra.mxu1 %v3901_v16 }
 0x587   :  { %3266 = vmatprep.subr.bf16.mxu0 %v3903_v22  ;;  %3298 = vmatprep.subr.bf16.mxu1 %v3905_v23 }
 0x588   :  { %1523 = vmatprep.mubr.f32.mxu0 %v3775_v20  ;;  %1594 = vmatprep.mubr.f32.mxu1 %v3775_v20 }
 0x58a   :  { %3268 = vmatpush1.bf16.msra.mxu0 %v3909_v31  ;;  %3300 = vmatpush1.bf16.msra.mxu1 %v3911_v32 }
 0x58b   :  { %3270 = vmatprep.subr.bf16.mxu0 %v3915_v36  ;;  %3302 = vmatprep.subr.bf16.mxu1 %v3917_v17 }
 0x58e   :  { %3272 = vmatpush1.bf16.msra.mxu0 %v3923_v43  ;;  %3304 = vmatpush1.bf16.msra.mxu1 %v3925_v44 }
 0x58f   :  { %3274 = vmatprep.subr.bf16.mxu0 %v3929_v47  ;;  %3306 = vmatprep.subr.bf16.mxu1 %v3931_v48 }
 0x592   :  { %3276 = vmatpush1.bf16.msra.mxu0 %v3935_v55  ;;  %3308 = vmatpush1.bf16.msra.mxu1 %v3937_v56 }
 0x593   :  { %3278 = vmatprep.subr.bf16.mxu0 %v3941_v59  ;;  %3310 = vmatprep.subr.bf16.mxu1 %v3943_v60 }
 0x596   :  { %3280 = vmatpush1.bf16.msra.mxu0 %v3947_v3  ;;  %3312 = vmatpush1.bf16.msra.mxu1 %v3949_v5 }
 0x597   :  { %3282 = vmatprep.subr.bf16.mxu0 %v3953_v9  ;;  %3314 = vmatprep.subr.bf16.mxu1 %v3955_v10 }
 0x59a   :  { %3284 = vmatpush1.bf16.msra.mxu0 %v3959_v21  ;;  %3316 = vmatpush1.bf16.msra.mxu1 %v3961_v24 }
 0x59b   :  { %3286 = vmatprep.subr.bf16.mxu0 %v3965_v27  ;;  %3318 = vmatprep.subr.bf16.mxu1 %v3967_v28 }
 0x59e   :  { %3288 = vmatpush1.bf16.msra.mxu0 %v3971_v39  ;;  %3320 = vmatpush1.bf16.msra.mxu1 %v3973_v40 }
 0x59f   :  { %3290 = vmatprep.subr.bf16.mxu0 %v3977_v42  ;;  %3322 = vmatprep.subr.bf16.mxu1 %v3979_v45 }
 0x5a2   :  { %3292 = vmatpush1.bf16.msra.mxu0 %v3983_v51  ;;  %3324 = vmatpush1.bf16.msra.mxu1 %v3985_v52 }
 0x5a3   :  { %3326 = vmatprep.subr.bf16.mxu0 %v3893_v4  ;;  %3358 = vmatprep.subr.bf16.mxu1 %v3895_v6 }
 0x658   :  { %v1329_v7 = vpop.f32.mrb[16].mxu0  ;;  %v1400_v61 = vpop.f32.mrb[10].mxu1 }
 0x659   :  { %v1409_v25 = vrot.slane %v1329_v7, 5  ;;  %v1331_v50 = vpop.f32.mrb[17].mxu0  ;;  %v1402_v53 = vpop.f32.mrb[11].mxu1  ;;  %v1411_v1 = vrot.slane %v1400_v61, 5  ;;  %v1441_v7 = vrot.slane %v4162_v26, 7 }
 0x65a   :  { %v1410_v57 = vrot.slane %v1331_v50, 5  ;;  %v1412_v63 = vrot.slane %v1402_v53, 5 }
 0x65b   :  { %v1417_v58 = vadd.f32 %v1409_v25, %v4035_v2  ;;  %v1419_v11 = vadd.f32 %v1411_v1, %v4047_v34 }
 0x65c   :  { %v1418_v0 = vadd.f32 %v1410_v57, %v4038_v8  ;;  %v1420_v13 = vadd.f32 %v1412_v63, %v4050_v38 }
 0x65d   :  { %v2632_v62 = vmul.f32 -1.442695, %v1417_v58  ;;  %v2634_v12 = vmul.f32 -1.442695, %v1419_v11 }
 0x65e   :  { %v2633_v54 = vmul.f32 -1.442695, %v1418_v0 }
 0x65f   :  { %3635 = vpow2.f32 %v2632_v62 }
 0x660   :  { %3637 = vpow2.f32 %v2633_v54 }
 0x661   :  { %3639 = vtanh.f32 %v1420_v13 }
 0x662   :  { %3641 = vpow2.f32 %v2634_v12 }
 0x669   :  { %v3636_v14 = vpop.eup %3635 }
 0x66a   :  { %v1430_v18 = vadd.f32 1.0, %v3636_v14  ;;  %v3638_v30 = vpop.eup %3637 }
 0x66b   :  { %v1431_v29 = vadd.f32 1.0, %v3638_v30  ;;  %v3640_v33 = vpop.eup %3639 }
 0x66c   :  { %3643 = vrcp.f32 %v1430_v18  ;;  %v3642_v37 = vpop.eup %3641 }
 0x66d   :  { %3645 = vrcp.f32 %v1431_v29  ;;  %v1432_v50 = vadd.f32 1.0, %v3642_v37 }
 0x66f   :  { %3647 = vrcp.f32 %v1432_v50 }
 0x676   :  { %v3644_v49 = vpop.eup %3643 }
 0x677   :  { %v1444_v61 = vmul.f32 %v3644_v49, %v3640_v33  ;;  %v3646_v25 = vpop.eup %3645 }
 0x678   :  { %v1443_v53 = vmul.f32 %v3646_v25, %v1441_v7 }
 0x679   :  { %v3648_v58 = vpop.eup %3647 }
 0x67a   :  { %v4218_v57 = vadd.f32 %v1444_v61, %v1443_v53 }
 0x67c   :  { %3649 = vtanh.f32 %v4218_v57 }
 0x686   :  { %v3650_v0 = vpop.eup %3649 }
 0x687   :  { %v1447_v62 = vmul.f32 %v3650_v0, %v3648_v58 }
 0x689   :  { %v1452_v54 = vrot.slane %v1447_v62, %v481_v19  ;;  %v1457_v26 = vrot.slane %v1447_v62, 3 }
 0x68b   :  { %v4228_v1 = vsel %vm1448_vm7, %v1452_v54, %v4172_v41  ;;  %v4233_v63 = vsel %vm1454_vm8, %v1452_v54, %v4177_v46  ;;  %1524 = vmatmul.mubr.f32.vlgmr.msra.gmra.mrb[18].mxu0 %v1457_v26  ;;  %1595 = vmatmul.mubr.f32.vlgmr.msra.gmra.mrb[12].mxu1 %v1457_v26  ;;  %v1637_v26 = vrot.slane %v4218_v57, 7 }
 0x68c   :  { %3328 = vmatpush1.bf16.msra.mxu0 %v3899_v15  ;;  %3360 = vmatpush1.bf16.msra.mxu1 %v3901_v16 }
 0x68d   :  { %3330 = vmatprep.subr.bf16.mxu0 %v3903_v22  ;;  %3362 = vmatprep.subr.bf16.mxu1 %v3905_v23 }
 0x68e   :  { %1717 = vmatprep.mubr.f32.mxu0 %v3775_v20  ;;  %1788 = vmatprep.mubr.f32.mxu1 %v3775_v20 }
 0x690   :  { %3332 = vmatpush1.bf16.msra.mxu0 %v3909_v31  ;;  %3364 = vmatpush1.bf16.msra.mxu1 %v3911_v32 }
 0x691   :  { %3334 = vmatprep.subr.bf16.mxu0 %v3915_v36  ;;  %3366 = vmatprep.subr.bf16.mxu1 %v3917_v17 }
 0x694   :  { %3336 = vmatpush1.bf16.msra.mxu0 %v3923_v43  ;;  %3368 = vmatpush1.bf16.msra.mxu1 %v3925_v44 }
 0x695   :  { %3338 = vmatprep.subr.bf16.mxu0 %v3929_v47  ;;  %3370 = vmatprep.subr.bf16.mxu1 %v3931_v48 }
 0x698   :  { %3340 = vmatpush1.bf16.msra.mxu0 %v3935_v55  ;;  %3372 = vmatpush1.bf16.msra.mxu1 %v3937_v56 }
 0x699   :  { %3342 = vmatprep.subr.bf16.mxu0 %v3941_v59  ;;  %3374 = vmatprep.subr.bf16.mxu1 %v3943_v60 }
 0x69c   :  { %3344 = vmatpush1.bf16.msra.mxu0 %v3947_v3  ;;  %3376 = vmatpush1.bf16.msra.mxu1 %v3949_v5 }
 0x69d   :  { %3346 = vmatprep.subr.bf16.mxu0 %v3953_v9  ;;  %3378 = vmatprep.subr.bf16.mxu1 %v3955_v10 }
 0x6a0   :  { %3348 = vmatpush1.bf16.msra.mxu0 %v3959_v21  ;;  %3380 = vmatpush1.bf16.msra.mxu1 %v3961_v24 }
 0x6a1   :  { %3350 = vmatprep.subr.bf16.mxu0 %v3965_v27  ;;  %3382 = vmatprep.subr.bf16.mxu1 %v3967_v28 }
 0x6a4   :  { %3352 = vmatpush1.bf16.msra.mxu0 %v3971_v39  ;;  %3384 = vmatpush1.bf16.msra.mxu1 %v3973_v40 }
 0x6a5   :  { %3354 = vmatprep.subr.bf16.mxu0 %v3977_v42  ;;  %3386 = vmatprep.subr.bf16.mxu1 %v3979_v45 }
 0x6a8   :  { %3356 = vmatpush1.bf16.msra.mxu0 %v3983_v51  ;;  %3388 = vmatpush1.bf16.msra.mxu1 %v3985_v52 }
 0x6a9   :  { %3390 = vmatprep.subr.bf16.mxu0 %v3893_v4  ;;  %3422 = vmatprep.subr.bf16.mxu1 %v3895_v6 }
 0x75e   :  { %v1525_v19 = vpop.f32.mrb[18].mxu0  ;;  %v1596_v41 = vpop.f32.mrb[12].mxu1 }
 0x75f   :  { %v1605_v46 = vrot.slane %v1525_v19, 4  ;;  %v1527_v11 = vpop.f32.mrb[19].mxu0  ;;  %v1598_v13 = vpop.f32.mrb[13].mxu1  ;;  %v1607_v33 = vrot.slane %v1596_v41, 4 }
 0x760   :  { %v1606_v12 = vrot.slane %v1527_v11, 4  ;;  %v1608_v37 = vrot.slane %v1598_v13, 4 }
 0x761   :  { %v1613_v14 = vadd.f32 %v1605_v46, %v4035_v2  ;;  %v1615_v49 = vadd.f32 %v1607_v33, %v4047_v34 }
 0x762   :  { %v1614_v18 = vadd.f32 %v1606_v12, %v4038_v8  ;;  %v1616_v7 = vadd.f32 %v1608_v37, %v4050_v38 }
 0x763   :  { %v2635_v30 = vmul.f32 -1.442695, %v1613_v14  ;;  %v2637_v61 = vmul.f32 -1.442695, %v1615_v49  ;;  %v1646_v14 = vsub.s32 4, %v3881_v35 }
 0x764   :  { %v2636_v29 = vmul.f32 -1.442695, %v1614_v18 }
 0x765   :  { %3651 = vpow2.f32 %v2635_v30 }
 0x766   :  { %3653 = vpow2.f32 %v2636_v29 }
 0x767   :  { %3655 = vtanh.f32 %v1616_v7 }
 0x768   :  { %3657 = vpow2.f32 %v2637_v61 }
 0x76f   :  { %v3652_v25 = vpop.eup %3651 }
 0x770   :  { %v1626_v50 = vadd.f32 1.0, %v3652_v25  ;;  %v3654_v53 = vpop.eup %3653 }
 0x771   :  { %v1627_v58 = vadd.f32 1.0, %v3654_v53  ;;  %v3656_v0 = vpop.eup %3655 }
 0x772   :  { %3659 = vrcp.f32 %v1626_v50  ;;  %v3658_v62 = vpop.eup %3657 }
 0x773   :  { %3661 = vrcp.f32 %v1627_v58  ;;  %v1628_v46 = vadd.f32 1.0, %v3658_v62 }
 0x775   :  { %3663 = vrcp.f32 %v1628_v46 }
 0x77c   :  { %v3660_v54 = vpop.eup %3659 }
 0x77d   :  { %v1640_v19 = vmul.f32 %v3660_v54, %v3656_v0  ;;  %v3662_v41 = vpop.eup %3661 }
 0x77e   :  { %v1639_v11 = vmul.f32 %v3662_v41, %v1637_v26 }
 0x77f   :  { %v3664_v12 = vpop.eup %3663 }
 0x780   :  { %v4274_v13 = vadd.f32 %v1640_v19, %v1639_v11 }
 0x782   :  { %3665 = vtanh.f32 %v4274_v13 }
 0x78c   :  { %v3666_v18 = vpop.eup %3665 }
 0x78d   :  { %v1643_v30 = vmul.f32 %v3666_v18, %v3664_v12 }
 0x78f   :  { %v1647_v29 = vrot.slane %v1643_v30, %v1646_v14  ;;  %v1651_v33 = vrot.slane %v1643_v30, 4  ;;  %v1831_v30 = vrot.slane %v4274_v13, 7 }
 0x791   :  { %v4281_v57 = vsel %vm1454_vm8, %v1647_v29, %v4228_v1  ;;  %v4286_v37 = vsel %vm1448_vm7, %v1647_v29, %v4233_v63  ;;  %1718 = vmatmul.mubr.f32.vlgmr.msra.gmra.mrb[20].mxu0 %v1651_v33  ;;  %1789 = vmatmul.mubr.f32.vlgmr.msra.gmra.mrb[14].mxu1 %v1651_v33 }
 0x792   :  { %3392 = vmatpush1.bf16.msra.mxu0 %v3899_v15  ;;  %3424 = vmatpush1.bf16.msra.mxu1 %v3901_v16 }
 0x793   :  { %3394 = vmatprep.subr.bf16.mxu0 %v3903_v22  ;;  %3426 = vmatprep.subr.bf16.mxu1 %v3905_v23 }
 0x794   :  { %1911 = vmatprep.mubr.f32.mxu0 %v3775_v20  ;;  %1982 = vmatprep.mubr.f32.mxu1 %v3775_v20 }
 0x796   :  { %3396 = vmatpush1.bf16.msra.mxu0 %v3909_v31  ;;  %3428 = vmatpush1.bf16.msra.mxu1 %v3911_v32 }
 0x797   :  { %3398 = vmatprep.subr.bf16.mxu0 %v3915_v36  ;;  %3430 = vmatprep.subr.bf16.mxu1 %v3917_v17 }
 0x79a   :  { %3400 = vmatpush1.bf16.msra.mxu0 %v3923_v43  ;;  %3432 = vmatpush1.bf16.msra.mxu1 %v3925_v44 }
 0x79b   :  { %3402 = vmatprep.subr.bf16.mxu0 %v3929_v47  ;;  %3434 = vmatprep.subr.bf16.mxu1 %v3931_v48 }
 0x79e   :  { %3404 = vmatpush1.bf16.msra.mxu0 %v3935_v55  ;;  %3436 = vmatpush1.bf16.msra.mxu1 %v3937_v56 }
 0x79f   :  { %3406 = vmatprep.subr.bf16.mxu0 %v3941_v59  ;;  %3438 = vmatprep.subr.bf16.mxu1 %v3943_v60 }
 0x7a2   :  { %3408 = vmatpush1.bf16.msra.mxu0 %v3947_v3  ;;  %3440 = vmatpush1.bf16.msra.mxu1 %v3949_v5 }
 0x7a3   :  { %3410 = vmatprep.subr.bf16.mxu0 %v3953_v9  ;;  %3442 = vmatprep.subr.bf16.mxu1 %v3955_v10 }
 0x7a6   :  { %3412 = vmatpush1.bf16.msra.mxu0 %v3959_v21  ;;  %3444 = vmatpush1.bf16.msra.mxu1 %v3961_v24 }
 0x7a7   :  { %3414 = vmatprep.subr.bf16.mxu0 %v3965_v27  ;;  %3446 = vmatprep.subr.bf16.mxu1 %v3967_v28 }
 0x7aa   :  { %3416 = vmatpush1.bf16.msra.mxu0 %v3971_v39  ;;  %3448 = vmatpush1.bf16.msra.mxu1 %v3973_v40 }
 0x7ab   :  { %3418 = vmatprep.subr.bf16.mxu0 %v3977_v42  ;;  %3450 = vmatprep.subr.bf16.mxu1 %v3979_v45 }
 0x7ae   :  { %3420 = vmatpush1.bf16.msra.mxu0 %v3983_v51  ;;  %3452 = vmatpush1.bf16.msra.mxu1 %v3985_v52 }
 0x7af   :  { %3454 = vmatprep.subr.bf16.mxu0 %v3893_v4  ;;  %3486 = vmatprep.subr.bf16.mxu1 %v3895_v6 }
 0x864   :  { %v1719_v1 = vpop.f32.mrb[20].mxu0  ;;  %v1790_v63 = vpop.f32.mrb[14].mxu1 }
 0x865   :  { %v1799_v49 = vrot.slane %v1719_v1, 3  ;;  %v1721_v7 = vpop.f32.mrb[21].mxu0  ;;  %v1792_v61 = vpop.f32.mrb[15].mxu1  ;;  %v1801_v62 = vrot.slane %v1790_v63, 3 }
 0x866   :  { %v1800_v25 = vrot.slane %v1721_v7, 3  ;;  %v1802_v54 = vrot.slane %v1792_v61, 3  ;;  %v1840_v61 = vsub.s32 5, %v3881_v35 }
 0x867   :  { %v1807_v50 = vadd.f32 %v1799_v49, %v4035_v2  ;;  %v1809_v4 = vadd.f32 %v1801_v62, %v4047_v34 }
 0x868   :  { %v1808_v53 = vadd.f32 %v1800_v25, %v4038_v8  ;;  %v1810_v6 = vadd.f32 %v1802_v54, %v4050_v38 }
 0x869   :  { %v2638_v58 = vmul.f32 -1.442695, %v1807_v50  ;;  %v2640_v26 = vmul.f32 -1.442695, %v1809_v4 }
 0x86a   :  { %v2639_v0 = vmul.f32 -1.442695, %v1808_v53 }
 0x86b   :  { %3667 = vpow2.f32 %v2638_v58 }
 0x86c   :  { %3669 = vpow2.f32 %v2639_v0 }
 0x86d   :  { %3671 = vtanh.f32 %v1810_v6 }
 0x86e   :  { %3673 = vpow2.f32 %v2640_v26  ;;  %v2250_v26 = vld [vmem:[%s4576_s3 + $0x80] sm:$0xff] }
 0x875   :  { %v3668_v19 = vpop.eup %3667 }
 0x876   :  { %v1820_v41 = vadd.f32 1.0, %v3668_v19  ;;  %v3670_v46 = vpop.eup %3669  ;;  %v2251_v19 = vld [vmem:[%s4576_s3 + $0x88] sm:$0xff] }
 0x877   :  { %v1821_v11 = vadd.f32 1.0, %v3670_v46  ;;  %v3672_v12 = vpop.eup %3671  ;;  %v3518_v46 = vpack.c.bf16 %v2251_v19, %v2250_v26 }
 0x878   :  { %3675 = vrcp.f32 %v1820_v41  ;;  %v3674_v14 = vpop.eup %3673  ;;  %v2234_v41 = vld [vmem:[%s4576_s3] sm:$0xff] }
 0x879   :  { %3677 = vrcp.f32 %v1821_v11  ;;  %v1822_v1 = vadd.f32 1.0, %v3674_v14  ;;  %v2235_v11 = vld [vmem:[%s4576_s3 + $0x8] sm:$0xff] }
 0x87a   :  { %v3542_v14 = vpack.c.bf16 %v2235_v11, %v2234_v41 }
 0x87b   :  { %3679 = vrcp.f32 %v1822_v1  ;;  %v2237_v1 = vld [vmem:[%s4576_s3 + $0x18] sm:$0xff] }
 0x882   :  { %v3676_v18 = vpop.eup %3675 }
 0x883   :  { %v1834_v29 = vmul.f32 %v3676_v18, %v3672_v12  ;;  %v3678_v33 = vpop.eup %3677  ;;  %v3776_v12 = vmov 0.0|0.0   ;;  %v2252_v18 = vld [vmem:[%s4576_s3 + $0x90] sm:$0xff] }
 0x884   :  { %v1833_v63 = vmul.f32 %v3678_v33, %v1831_v30  ;;  %v2253_v30 = vld [vmem:[%s4576_s3 + $0x98] sm:$0xff] }
 0x885   :  { %v3680_v7 = vpop.eup %3679  ;;  %v3521_v33 = vpack.c.bf16 %v2253_v30, %v2252_v18 }
 0x886   :  { %v4327_v49 = vadd.f32 %v1834_v29, %v1833_v63  ;;  %v2236_v29 = vld [vmem:[%s4576_s3 + $0x10] sm:$0xff] }
 0x887   :  { %v3545_v63 = vpack.c.bf16 %v2237_v1, %v2236_v29 }
 0x888   :  { %3681 = vtanh.f32 %v4327_v49 }
 0x892   :  { %v3682_v25 = vpop.eup %3681 }
 0x893   :  { %v1837_v50 = vmul.f32 %v3682_v25, %v3680_v7  ;;  %v2255_v7 = vld [vmem:[%s4576_s3 + $0xa8] sm:$0xff] }
 0x895   :  { %v1841_v53 = vrot.slane %v1837_v50, %v1840_v61  ;;  %v1845_v58 = vrot.slane %v1837_v50, 5  ;;  %v2238_v61 = vld [vmem:[%s4576_s3 + $0x20] sm:$0xff]  ;;  %v2239_v50 = vld [vmem:[%s4576_s3 + $0x28] sm:$0xff] }
 0x897   :  { %v4334_v13 = vsel %vm1258_vm6, %v1841_v53, %v4281_v57  ;;  %v4339_v0 = vsel %vm1252_vm5, %v1841_v53, %v4286_v37  ;;  %1912 = vmatmul.mubr.f32.vlgmr.msra.gmra.mrb[22].mxu0 %v1845_v58  ;;  %1983 = vmatmul.mubr.f32.vlgmr.msra.gmra.mrb[16].mxu1 %v1845_v58  ;;  %v3548_v53 = vpack.c.bf16 %v2239_v50, %v2238_v61  ;;  %v2256_v58 = vld [vmem:[%s4576_s3 + $0xb0] sm:$0xff] }
 0x898   :  { %3456 = vmatpush1.bf16.msra.mxu0 %v3899_v15  ;;  %3488 = vmatpush1.bf16.msra.mxu1 %v3901_v16 }
 0x899   :  { %3458 = vmatprep.subr.bf16.mxu0 %v3903_v22  ;;  %3490 = vmatprep.subr.bf16.mxu1 %v3905_v23 }
 0x89a   :  { %2105 = vmatprep.mubr.f32.mxu0 %v3775_v20  ;;  %2176 = vmatprep.mubr.f32.mxu1 %v3775_v20 }
 0x89c   :  { %3460 = vmatpush1.bf16.msra.mxu0 %v3909_v31  ;;  %3492 = vmatpush1.bf16.msra.mxu1 %v3911_v32 }
 0x89d   :  { %3462 = vmatprep.subr.bf16.mxu0 %v3915_v36  ;;  %3494 = vmatprep.subr.bf16.mxu1 %v3917_v17 }
 0x8a0   :  { %3464 = vmatpush1.bf16.msra.mxu0 %v3923_v43  ;;  %3496 = vmatpush1.bf16.msra.mxu1 %v3925_v44 }
 0x8a1   :  { %3466 = vmatprep.subr.bf16.mxu0 %v3929_v47  ;;  %3498 = vmatprep.subr.bf16.mxu1 %v3931_v48 }
 0x8a4   :  { %3468 = vmatpush1.bf16.msra.mxu0 %v3935_v55  ;;  %3500 = vmatpush1.bf16.msra.mxu1 %v3937_v56 }
 0x8a5   :  { %3470 = vmatprep.subr.bf16.mxu0 %v3941_v59  ;;  %3502 = vmatprep.subr.bf16.mxu1 %v3943_v60 }
 0x8a8   :  { %3472 = vmatpush1.bf16.msra.mxu0 %v3947_v3  ;;  %3504 = vmatpush1.bf16.msra.mxu1 %v3949_v5 }
 0x8a9   :  { %3474 = vmatprep.subr.bf16.mxu0 %v3953_v9  ;;  %3506 = vmatprep.subr.bf16.mxu1 %v3955_v10 }
 0x8ac   :  { %3476 = vmatpush1.bf16.msra.mxu0 %v3959_v21  ;;  %3508 = vmatpush1.bf16.msra.mxu1 %v3961_v24 }
 0x8ad   :  { %3478 = vmatprep.subr.bf16.mxu0 %v3965_v27  ;;  %3510 = vmatprep.subr.bf16.mxu1 %v3967_v28  ;;  %v2025_v27 = vrot.slane %v4327_v49, 7  ;;  %v2254_v49 = vld [vmem:[%s4576_s3 + $0xa0] sm:$0xff] }
 0x8ae   :  { %v3524_v25 = vpack.c.bf16 %v2255_v7, %v2254_v49 }
 0x8b0   :  { %3480 = vmatpush1.bf16.msra.mxu0 %v3971_v39  ;;  %3512 = vmatpush1.bf16.msra.mxu1 %v3973_v40 }
 0x8b1   :  { %3482 = vmatprep.subr.bf16.mxu0 %v3977_v42  ;;  %3514 = vmatprep.subr.bf16.mxu1 %v3979_v45 }
 0x8b4   :  { %3484 = vmatpush1.bf16.msra.mxu0 %v3983_v51  ;;  %3516 = vmatpush1.bf16.msra.mxu1 %v3985_v52  ;;  %v2034_v52 = vsub.s32 6, %v3881_v35 }
 0x8b5   :  { %3517 = vmatprep.subr.bf16.mxu0 %v3776_v12  ;;  %3541 = vmatprep.subr.bf16.mxu1 %v3776_v12 }
 0x96a   :  { %v1913_v15 = vpop.f32.mrb[22].mxu0  ;;  %v1984_v16 = vpop.f32.mrb[16].mxu1 }
 0x96b   :  { %v1993_v22 = vrot.slane %v1913_v15, 2  ;;  %v1915_v23 = vpop.f32.mrb[23].mxu0  ;;  %v1986_v31 = vpop.f32.mrb[17].mxu1  ;;  %v1995_v47 = vrot.slane %v1984_v16, 2  ;;  %v2241_v16 = vld [vmem:[%s4576_s3 + $0x38] sm:$0xff] }
 0x96c   :  { %v1994_v32 = vrot.slane %v1915_v23, 2  ;;  %v1996_v48 = vrot.slane %v1986_v31, 2  ;;  %v2258_v23 = vld [vmem:[%s4576_s3 + $0xc0] sm:$0xff]  ;;  %v2259_v31 = vld [vmem:[%s4576_s3 + $0xc8] sm:$0xff] }
 0x96d   :  { %v2001_v36 = vadd.f32 %v1993_v22, %v4035_v2  ;;  %v2003_v55 = vadd.f32 %v1995_v47, %v4047_v34  ;;  %v2261_v47 = vld [vmem:[%s4576_s3 + $0xd8] sm:$0xff] }
 0x96e   :  { %v2002_v17 = vadd.f32 %v1994_v32, %v4038_v8  ;;  %v2004_v56 = vadd.f32 %v1996_v48, %v4050_v38  ;;  %v2242_v32 = vld [vmem:[%s4576_s3 + $0x40] sm:$0xff]  ;;  %v2244_v48 = vld [vmem:[%s4576_s3 + $0x50] sm:$0xff] }
 0x96f   :  { %v2641_v43 = vmul.f32 -1.442695, %v2001_v36  ;;  %v2643_v59 = vmul.f32 -1.442695, %v2003_v55  ;;  %v3530_v36 = vpack.c.bf16 %v2259_v31, %v2258_v23 }
 0x970   :  { %v2642_v44 = vmul.f32 -1.442695, %v2002_v17  ;;  %v2243_v17 = vld [vmem:[%s4576_s3 + $0x48] sm:$0xff] }
 0x971   :  { %3683 = vpow2.f32 %v2641_v43  ;;  %v3554_v43 = vpack.c.bf16 %v2243_v17, %v2242_v32  ;;  %v2415_v32 = vld [vmem:[%s4576_s3 + $0x118] sm:$0xff]  ;;  %v2497_v17 = vld [vmem:[%s4576_s3 + $0x130] sm:$0xff] }
 0x972   :  { %3685 = vpow2.f32 %v2642_v44  ;;  %v2260_v44 = vld [vmem:[%s4576_s3 + $0xd0] sm:$0xff] }
 0x973   :  { %3687 = vtanh.f32 %v2004_v56  ;;  %v3533_v55 = vpack.c.bf16 %v2261_v47, %v2260_v44  ;;  %v2245_v56 = vld [vmem:[%s4576_s3 + $0x58] sm:$0xff] }
 0x974   :  { %3689 = vpow2.f32 %v2643_v59  ;;  %v3557_v59 = vpack.c.bf16 %v2245_v56, %v2244_v48 }
 0x97b   :  { %v3684_v60 = vpop.eup %3683 }
 0x97c   :  { %v2014_v3 = vadd.f32 1.0, %v3684_v60  ;;  %v3686_v5 = vpop.eup %3685  ;;  %v2262_v60 = vld [vmem:[%s4576_s3 + $0xe0] sm:$0xff] }
 0x97d   :  { %v2015_v9 = vadd.f32 1.0, %v3686_v5  ;;  %v3688_v10 = vpop.eup %3687  ;;  %v2246_v5 = vld [vmem:[%s4576_s3 + $0x60] sm:$0xff] }
 0x97e   :  { %3691 = vrcp.f32 %v2014_v3  ;;  %v3690_v21 = vpop.eup %3689  ;;  %v2263_v3 = vld [vmem:[%s4576_s3 + $0xe8] sm:$0xff] }
 0x97f   :  { %3693 = vrcp.f32 %v2015_v9  ;;  %v2016_v40 = vadd.f32 1.0, %v3690_v21  ;;  %v3536_v9 = vpack.c.bf16 %v2263_v3, %v2262_v60  ;;  %v2264_v21 = vld [vmem:[%s4576_s3 + $0xf0] sm:$0xff] }
 0x981   :  { %3695 = vrcp.f32 %v2016_v40 }
 0x988   :  { %v3692_v24 = vpop.eup %3691 }
 0x989   :  { %v2028_v28 = vmul.f32 %v3692_v24, %v3688_v10  ;;  %v3694_v39 = vpop.eup %3693  ;;  %v2247_v10 = vld [vmem:[%s4576_s3 + $0x68] sm:$0xff]  ;;  %v2265_v24 = vld [vmem:[%s4576_s3 + $0xf8] sm:$0xff] }
 0x98a   :  { %v2027_v42 = vmul.f32 %v3694_v39, %v2025_v27  ;;  %v3560_v27 = vpack.c.bf16 %v2247_v10, %v2246_v5  ;;  %v2249_v39 = vld [vmem:[%s4576_s3 + $0x78] sm:$0xff]  ;;  %v3539_v40 = vpack.c.bf16 %v2265_v24, %v2264_v21  ;;  %v2648_v21 = vld [vmem:[%s4576_s3 + $0x128] ss:$0 sm:$0xff] }
 0x98b   :  { %v3696_v51 = vpop.eup %3695 }
 0x98c   :  { %v4378_v45 = vadd.f32 %v2028_v28, %v2027_v42  ;;  %v2248_v28 = vld [vmem:[%s4576_s3 + $0x70] sm:$0xff] }
 0x98d   :  { %v3563_v42 = vpack.c.bf16 %v2249_v39, %v2248_v28 }
 0x98e   :  { %3697 = vtanh.f32 %v4378_v45  ;;  %v2219_v61 = vrot.slane %v4378_v45, 7 }
 0x998   :  { %v3698_v57 = vpop.eup %3697 }
 0x999   :  { %v2031_v37 = vmul.f32 %v3698_v57, %v3696_v51 }
 0x99b   :  { %v2035_v62 = vrot.slane %v2031_v37, %v2034_v52  ;;  %v2039_v54 = vrot.slane %v2031_v37, 6 }
 0x99d   :  { %v4385_v4 = vsel %vm1062_vm4, %v2035_v62, %v4334_v13  ;;  %v4390_v6 = vsel %vm1056_vm3, %v2035_v62, %v4339_v0  ;;  %2106 = vmatmul.mubr.f32.vlgmr.msra.gmra.mrb[24].mxu0 %v2039_v54  ;;  %2177 = vmatmul.mubr.f32.vlgmr.msra.gmra.mrb[18].mxu1 %v2039_v54  ;;  %v2257_v13 = vld [vmem:[%s4576_s3 + $0xb8] sm:$0xff]  ;;  %v2240_v0 = vld [vmem:[%s4576_s3 + $0x30] sm:$0xff] }
 0x99e   :  { %3519 = vmatpush3.bf16.msra.mxu0 %v3518_v46  ;;  %3543 = vmatpush3.bf16.msra.mxu1 %v3542_v14  ;;  %v3527_v15 = vpack.c.bf16 %v2257_v13, %v2256_v58  ;;  %v3551_v22 = vpack.c.bf16 %v2241_v16, %v2240_v0  ;;  %v2228_v13 = vsub.s32 7, %v3881_v35  ;;  %v2414_v35 = vld [vmem:[%s4576_s3 + $0x110] sm:$0xff] }
 0x99f   :  { %3520 = vmatprep.subr.bf16.mxu0 %v3776_v12  ;;  %3544 = vmatprep.subr.bf16.mxu1 %v3776_v12 }
 0x9a0   :  { %2793 = vmatprep.mubr.msk.f32.mxu0 %vm3777_vm9, %v3775_v20  ;;  %2828 = vmatprep.mubr.msk.f32.mxu1 %vm3777_vm9, %v3775_v20 }
 0x9a2   :  { %3522 = vmatpush3.bf16.msra.mxu0 %v3521_v33  ;;  %3546 = vmatpush3.bf16.msra.mxu1 %v3545_v63 }
 0x9a3   :  { %3523 = vmatprep.subr.bf16.mxu0 %v3776_v12  ;;  %3547 = vmatprep.subr.bf16.mxu1 %v3776_v12 }
 0x9a6   :  { %3525 = vmatpush3.bf16.msra.mxu0 %v3524_v25  ;;  %3549 = vmatpush3.bf16.msra.mxu1 %v3548_v53 }
 0x9a7   :  { %3526 = vmatprep.subr.bf16.mxu0 %v3776_v12  ;;  %3550 = vmatprep.subr.bf16.mxu1 %v3776_v12 }
 0x9aa   :  { %3528 = vmatpush3.bf16.msra.mxu0 %v3527_v15  ;;  %3552 = vmatpush3.bf16.msra.mxu1 %v3551_v22 }
 0x9ab   :  { %3529 = vmatprep.subr.bf16.mxu0 %v3776_v12  ;;  %3553 = vmatprep.subr.bf16.mxu1 %v3776_v12 }
 0x9ae   :  { %3531 = vmatpush3.bf16.msra.mxu0 %v3530_v36  ;;  %3555 = vmatpush3.bf16.msra.mxu1 %v3554_v43  ;;  %v2498_v43 = vld [vmem:[%s4576_s3 + $0x138] sm:$0xff] }
 0x9af   :  { %3532 = vmatprep.subr.bf16.mxu0 %v3776_v12  ;;  %3556 = vmatprep.subr.bf16.mxu1 %v3776_v12  ;;  %v3572_v44 = vpack.c.bf16 %v2498_v43, %v2497_v17 }
 0x9b2   :  { %3534 = vmatpush3.bf16.msra.mxu0 %v3533_v55  ;;  %3558 = vmatpush3.bf16.msra.mxu1 %v3557_v59  ;;  %v2647_v55 = vld [vmem:[%s4576_s3 + $0x100] ss:$0 sm:$0xff] }
 0x9b3   :  { %3535 = vmatprep.subr.bf16.mxu0 %v3776_v12  ;;  %3559 = vmatprep.subr.bf16.mxu1 %v3776_v12 }
 0x9b6   :  { %3537 = vmatpush3.bf16.msra.mxu0 %v3536_v9  ;;  %3561 = vmatpush3.bf16.msra.mxu1 %v3560_v27  ;;  %v2499_v9 = vld [vmem:[%s4576_s3 + $0x140] sm:$0xff] }
 0x9b7   :  { %3538 = vmatprep.subr.bf16.mxu0 %v3776_v12  ;;  %3562 = vmatprep.subr.bf16.mxu1 %v3776_v12 }
 0x9ba   :  { %3540 = vmatpush3.bf16.msra.mxu0 %v3539_v40  ;;  %3564 = vmatpush3.bf16.msra.mxu1 %v3563_v42  ;;  %v2650_v40 = vld [vmem:[%s4576_s3 + $0x150] ss:$0 sm:$0xff] }
 0x9bb   :  { %3565 = vmatprep.subr.bf16.mxu0 %v3776_v12  ;;  %3571 = vmatprep.subr.bf16.mxu1 %v3776_v12 }
 0xa70   :  { %v2107_v51 = vpop.f32.mrb[24].mxu0  ;;  %v2178_v52 = vpop.f32.mrb[18].mxu1 }
 0xa71   :  { %v2187_v57 = vrot.slane %v2107_v51, 1  ;;  %v2109_v37 = vpop.f32.mrb[25].mxu0  ;;  %v2180_v62 = vpop.f32.mrb[19].mxu1  ;;  %v2189_v11 = vrot.slane %v2178_v52, 1 }
 0xa72   :  { %v2188_v54 = vrot.slane %v2109_v37, 1  ;;  %v2190_v14 = vrot.slane %v2180_v62, 1 }
 0xa73   :  { %v2195_v26 = vadd.f32 %v2187_v57, %v4035_v2  ;;  %v2197_v18 = vadd.f32 %v2189_v11, %v4047_v34 }
 0xa74   :  { %v2196_v19 = vadd.f32 %v2188_v54, %v4038_v8  ;;  %v2198_v30 = vadd.f32 %v2190_v14, %v4050_v38 }
 0xa75   :  { %v2644_v41 = vmul.f32 -1.442695, %v2195_v26  ;;  %v2646_v29 = vmul.f32 -1.442695, %v2197_v18 }
 0xa76   :  { %v2645_v46 = vmul.f32 -1.442695, %v2196_v19 }
 0xa77   :  { %3699 = vpow2.f32 %v2644_v41 }
 0xa78   :  { %3701 = vpow2.f32 %v2645_v46 }
 0xa79   :  { %3703 = vtanh.f32 %v2198_v30 }
 0xa7a   :  { %3705 = vpow2.f32 %v2646_v29 }
 0xa81   :  { %v3700_v33 = vpop.eup %3699 }
 0xa82   :  { %v2208_v1 = vadd.f32 1.0, %v3700_v33  ;;  %v3702_v63 = vpop.eup %3701 }
 0xa83   :  { %v2209_v2 = vadd.f32 1.0, %v3702_v63  ;;  %v3704_v8 = vpop.eup %3703 }
 0xa84   :  { %3707 = vrcp.f32 %v2208_v1  ;;  %v3706_v49 = vpop.eup %3705 }
 0xa85   :  { %3709 = vrcp.f32 %v2209_v2  ;;  %v2210_v53 = vadd.f32 1.0, %v3706_v49 }
 0xa87   :  { %3711 = vrcp.f32 %v2210_v53 }
 0xa8e   :  { %v3708_v7 = vpop.eup %3707 }
 0xa8f   :  { %v2222_v25 = vmul.f32 %v3708_v7, %v3704_v8  ;;  %v3710_v50 = vpop.eup %3709 }
 0xa90   :  { %v2221_v34 = vmul.f32 %v3710_v50, %v2219_v61 }
 0xa91   :  { %v3712_v38 = vpop.eup %3711 }
 0xa92   :  { %v2223_v58 = vadd.f32 %v2222_v25, %v2221_v34 }
 0xa94   :  { %3713 = vtanh.f32 %v2223_v58 }
 0xa9e   :  { %v3714_v0 = vpop.eup %3713 }
 0xa9f   :  { %v2225_v15 = vmul.f32 %v3714_v0, %v3712_v38 }
 0xaa1   :  { %v2229_v16 = vrot.slane %v2225_v15, %v2228_v13 }
 0xaa3   :  { %v2230_v22 = vsel %vm869_vm2, %v2229_v16, %v4385_v4  ;;  %v2231_v45 = vsel %vm863_vm1, %v2229_v16, %v4390_v6  ;;  %v2413_v4 = vld [vmem:[%s4576_s3 + $0x108] sm:$0xff] }
 0xaa4   :  { %3715 = vtanh.f32 %v2230_v22  ;;  %v3566_v6 = vpack.c.bf16 %v2414_v35, %v2413_v4 }
 0xaa5   :  { %3717 = vtanh.f32 %v2231_v45 }
 0xaae   :  { %v3716_v23 = vpop.eup %3715 }
 0xaaf   :  { %v3718_v31 = vpop.eup %3717  ;;  %2829 = vmatmul.mubr.f32.vlgmr.msra.gmra.mrb[20].mxu1 %v3716_v23 }
 0xab0   :  { %2794 = vmatmul.mubr.f32.vlgmr.msra.gmra.mrb[26].mxu0 %v3718_v31  ;;  %2850 = vmatprep.mubr.msk.f32.mxu1 %vm3777_vm9, %v3775_v20 }
 0xab1   :  { %2839 = vmatprep.mubr.msk.f32.mxu0 %vm3777_vm9, %v3775_v20  ;;  %3567 = vmatpush3.bf16.msra.mxu0 %v3566_v6  ;;  %v2416_v20 = vld [vmem:[%s4576_s3 + $0x120] sm:$0xff] }
 0xab2   :  { %3568 = vmatprep.subr.bf16.mxu0 %v3776_v12  ;;  %v3569_v36 = vpack.c.bf16 %v2416_v20, %v2415_v32  ;;  %3573 = vmatpush3.bf16.msra.mxu1 %v3572_v44 }
 0xab3   :  { %3574 = vmatprep.subr.bf16.mxu1 %v3776_v12  ;;  %v2500_v12 = vld [vmem:[%s4576_s3 + $0x148] sm:$0xff] }
 0xab4   :  { %v3575_v10 = vpack.c.bf16 %v2500_v12, %v2499_v9 }
 0xab5   :  { %3570 = vmatpush3.bf16.msra.mxu0 %v3569_v36 }
 0xab6   :  { %3576 = vmatpush3.bf16.msra.mxu1 %v3575_v10 }
 0xb82   :  { %v2402_v47 = vpop.f32.mrb[20].mxu1 }
 0xb83   :  { %v2332_v48 = vpop.f32.mrb[26].mxu0  ;;  %v2830_v56 = vpop.f32.mrb[21].mxu1 }
 0xb84   :  { %v2403_v59 = vadd.f32 %v2402_v47, %v2332_v48  ;;  %v2795_v60 = vpop.f32.mrb[27].mxu0 }
 0xb86   :  { %v2411_v3 = vadd.f32 %v2647_v55, %v2403_v59 }
 0xb88   :  { %v2412_v5 = vmax.f32 %v2411_v3, 0.0 }
 0xb8a   :  { %2840 = vmatmul.mubr.msk.f32.vlgmr.msra.gmra.mrb[28].mxu0 %vm2422_vm10, %v2412_v5 }
 0xc5d   :  { %v2492_v24 = vpop.f32.mrb[28].mxu0 }
 0xc5e   :  { %v2493_v27 = vadd.f32 %v2648_v21, %v2492_v24  ;;  %v2841_v28 = vpop.f32.mrb[29].mxu0 }
 0xc60   :  { %v2496_v39 = vmax.f32 %v2493_v27, 0.0 }
 0xc62   :  { %2851 = vmatmul.mubr.msk.f32.vlgmr.msra.gmra.mrb[22].mxu1 %vm2422_vm10, %v2496_v39 }
 0xd35   :  { %v2575_v42 = vpop.f32.mrb[22].mxu1 }
 0xd36   :  { %v2576_v51 = vadd.f32 %v2650_v40, %v2575_v42  ;;  %v2852_v52 = vpop.f32.mrb[23].mxu1 }
 0xd38   :  { %v2652_v57 = vmul.f32 -1.442695, %v2576_v51 }
 0xd3a   :  { %3719 = vpow2.f32 %v2652_v57 }
 0xd44   :  { %v3720_v37 = vpop.eup %3719 }
 0xd45   :  { %v2582_v62 = vadd.f32 1.0, %v3720_v37 }
 0xd47   :  { %3721 = vrcp.f32 %v2582_v62 }
 0xd51   :  { %v3722_v54 = vpop.eup %3721 }
 0xd52   :  { %2586 = vst.msk [vmem:[#allocation5] sm:$0xff] %vm2585_vm11, %v3722_v54 }
 0xd53   :  { %3756 = shalt.err (!%p3753_p12)
}
 0xd54   :  { %s3757_s29 = scalar_lea.hbm %s4577_s4, 128 }
 0xd55   :  { %p3758_p13 = scmp.ne.s32.totalorder %s4577_s4, %s3757_s29  ;;  %p3761_p0 = scmp.lt.u32.totalorder %s3757_s29, %s4577_s4 }
 0xd57   :  { %p3763_p1 = pnand %p3761_p0, %p3758_p13 }
 0xd59   :  { %3766 = shalt.err (!%p3763_p1)
}
 0xd5a   :  { %2596 = dma.vmem_to_hbm [thread:$0]  %s2594_s0, 128, %s4577_s4, [#allocation4]  }
 0xd5b   :  { %3769 = dma.done.wait [#allocation4], 128  }
 0xd5c   :  { %3770 = vsyncadd [#allocation4], 4294967168 }
 0xd5d   :  { %2600 = vsyncpa [#allocation3], 1 }
 0xd5e   :  { %2601 = vsyncpa [#allocation4], 1 }

</bundles_post_ra>
